<compile_context>
chip_gen: v6e
topology: v6e:2x2x1
jax: 0.10.0
libtpu: 0.0.40
codegen_flags: <defaults>
</compile_context>

<pallas_src>
import functools
import math

import jax
import jax.numpy as jnp
import numpy as np
from jax.experimental import pallas as pl
from jax.experimental.pallas import tpu as pltpu

# ---- small, module-consistent problem sizes ----
B, L = 2, 8
TOKEN_DIM = 32
NODE_DIM = 16
EDGE_DIM = 8
NUM_HEADS = 4
MLP_DIM = 64          # mlp_dim = token_dim * 2 (the module default)
EPS = 1e-5            # torch.nn.LayerNorm default eps


def _ln(x):
    """LayerNorm over the last axis, no affine (PyTorch semantics, biased var)."""
    mu = jnp.mean(x, axis=-1, keepdims=True)
    var = jnp.mean((x - mu) ** 2, axis=-1, keepdims=True)
    return (x - mu) * jax.lax.rsqrt(var + EPS)


def _silu(x):
    return x * jax.nn.sigmoid(x)


def _round16(n):
    return (n + 15) // 16 * 16


def _slab_layout(nd, d, e, m):
    """Row offsets of each weight inside the packed bf16 slab.

    Every region starts at a multiple of 16 rows so slab loads never straddle a
    packed bf16 (16,128) tile at an odd offset.
    """
    names_rows = [("W1", nd), ("W2", nd), ("We", e), ("Wqkv", d),
                  ("Wo", d), ("Wm1", d), ("Wm2", m)]
    offs, r = {}, 0
    for name, rows in names_rows:
        offs[name] = r
        r += _round16(rows)
    lanes = max(6 * d, 3 * d, m, nd)     # widest row is the adaLN W2 (6*D)
    return offs, r, lanes


def _attention_block_kernel(h_ref, s_ref, p_ref, vec_ref, w_ref, out_ref, *,
                            num_heads, b_size, seq_l, mlp_dim):
    f32, bf16 = jnp.float32, jnp.bfloat16
    bl, d = h_ref.shape                    # (B*L, D)
    nd = s_ref.shape[-1]
    e = p_ref.shape[-1]
    m = mlp_dim
    hh = num_heads
    hd = d // hh
    hb = hh * b_size
    l = seq_l

    offs, _, _ = _slab_layout(nd, d, e, m)

    # ---- packed parameter views (static slices, zero-copy) ----
    vecs = vec_ref[...]                                      # (16, 128) f32
    gs, bs, b1 = vecs[0:1, :nd], vecs[1:2, :nd], vecs[2:3, :nd]
    gp, bp, be = vecs[3:4, :e], vecs[4:5, :e], vecs[5:6, :hh]
    bqkv = vecs[6:7, :3 * d]                                 # scale folded into bq
    bo, bm1, bm2 = vecs[7:8, :d], vecs[8:9, :m], vecs[9:10, :d]

    def w(name, rows, cols):
        r0 = offs[name]
        return w_ref[r0:r0 + rows, 0:cols]                   # bf16 view

    w1 = w("W1", nd, nd)
    w2 = w("W2", nd, 6 * d)
    we = w("We", e, hh)
    wqkv = w("Wqkv", d, 3 * d)
    wo = w("Wo", d, d)
    wm1 = w("Wm1", d, m)
    wm2 = w("Wm2", m, d)

    def mm(a, b):                                            # 2-D matmul, f32 acc
        return jnp.dot(a.astype(bf16), b.astype(bf16), preferred_element_type=f32)

    def bmm(a, b, ca, cb):                                   # batched over dim 0
        return jax.lax.dot_general(
            a.astype(bf16), b.astype(bf16),
            dimension_numbers=(((ca,), (cb,)), ((0,), (0,))),
            preferred_element_type=f32)

    # --- adaLN modulation: LN(affine) -> Linear -> SiLU -> ONE fused Linear ---
    s = s_ref[...]
    t = _silu(mm(_ln(s) * gs + bs, w1) + b1)                 # (B*L, ND)
    mods = mm(t, w2)                                         # (B*L, 6*D)

    def chunk(i):                                            # 32-lane slice + b2 chunk
        return mods[:, i * d:(i + 1) * d] + vecs[10 + i:11 + i, :d]

    shift_msa, scale_msa, gate_msa = chunk(0), chunk(1), chunk(2)
    shift_mlp, scale_mlp, gate_mlp = chunk(3), chunk(4), chunk(5)

    # --- ln_1 + modulate ---
    h = h_ref[...]
    x = _ln(h) * (1.0 + scale_msa) + shift_msa               # (B*L, D)

    # --- edge features -> additive attention bias, head-major (H*B, L, L) ---
    pn = _ln(p_ref[...]) * gp + bp                           # (B*L*L, E)
    bias_cols = mm(pn, we) + be                              # (B*L*L, H)
    bias4 = bias_cols.reshape(b_size, l, l, hh)              # aligned leading split
    bias_hb = jnp.concatenate(
        [bias4[:, :, :, n] for n in range(hh)], axis=0)      # (H*B, L, L)

    # --- fused QKV projection (ONE matmul), head-major split ---
    qkv = mm(x, wqkv) + bqkv                                 # (B*L, 3*D)
    heads = jnp.concatenate(
        [qkv[:, n * 3 * hd:(n + 1) * 3 * hd] for n in range(hh)], axis=0)
    heads = heads.reshape(hb, l, 3 * hd)                     # (H*B, L, 3*hd)
    q = heads[:, :, 0:hd]                                    # scale already folded in
    k = heads[:, :, hd:2 * hd]
    v = heads[:, :, 2 * hd:3 * hd]

    # --- multi-head self-attention, fully batched over (head, batch) ---
    sc = bmm(q, k, 2, 2) + bias_hb                           # (H*B, L, L)
    sc = sc - jnp.max(sc, axis=-1, keepdims=True)
    ex = jnp.exp(sc)
    att = ex * pl.reciprocal(jnp.sum(ex, axis=-1, keepdims=True), approx=True)
    o = bmm(att, v, 2, 1)                                    # (H*B, L, hd)

    # merge heads back into lanes (concat), then ONE output projection
    merged = jnp.concatenate(
        [o[n * b_size:(n + 1) * b_size] for n in range(hh)], axis=-1)  # (B, L, D)
    attn = mm(merged.reshape(bl, d), wo) + bo                # (B*L, D)

    # --- gated residual 1 ---
    h1 = h + attn * gate_msa

    # --- ln_2 + modulate + MLP + gated residual 2 ---
    y = _ln(h1) * (1.0 + scale_mlp) + shift_mlp
    y = _silu(mm(y, wm1) + bm1)
    y = mm(y, wm2) + bm2
    out_ref[...] = (h1 + y * gate_mlp).astype(out_ref.dtype)
    # NOTE: output stays (B*L, D); a lane-dense (B, L*D) store would need a
    # sublane->lane relayout that costs more than the masked store saves here.


def pack_params(P, num_heads):
    """Pack the 22 logical parameters into 2 kernel operands. Run ONCE, reuse."""
    f32, bf16 = jnp.float32, jnp.bfloat16
    nd = P["W1"].shape[0]
    d = P["Wq"].shape[0]
    e = P["We"].shape[0]
    m = P["Wm1"].shape[1]
    hh = num_heads
    hd = d // hh
    scale = 1.0 / math.sqrt(hd)
    assert max(nd, d, e, hh, m, 3 * d) <= 128

    def row(v):
        v = jnp.asarray(v, f32).reshape(-1)
        return jnp.pad(v, (0, 128 - v.shape[0]))

    # fused, head-major QKV weight/bias; 1/sqrt(hd) score scale folded into Q
    wq, bq = P["Wq"] * scale, jnp.asarray(P["bq"], f32).reshape(-1) * scale
    wk, bk = P["Wk"], jnp.asarray(P["bk"], f32).reshape(-1)
    wv, bv = P["Wv"], jnp.asarray(P["bv"], f32).reshape(-1)
    wqkv = jnp.concatenate(
        [jnp.concatenate([wq[:, n * hd:(n + 1) * hd],
                          wk[:, n * hd:(n + 1) * hd],
                          wv[:, n * hd:(n + 1) * hd]], axis=1) for n in range(hh)],
        axis=1)                                               # (D, 3*D)
    bqkv = jnp.concatenate(
        [jnp.concatenate([bq[n * hd:(n + 1) * hd],
                          bk[n * hd:(n + 1) * hd],
                          bv[n * hd:(n + 1) * hd]]) for n in range(hh)])   # (3*D,)

    b2 = jnp.asarray(P["b2"], f32).reshape(6, d)
    vecs = jnp.stack(
        [row(P["gs"]), row(P["bs"]), row(P["b1"]),
         row(P["gp"]), row(P["bp"]), row(P["be"]),
         row(bqkv), row(P["bo"]), row(P["bm1"]), row(P["bm2"])]
        + [row(b2[i]) for i in range(6)])                     # (16, 128) f32

    offs, rows, lanes = _slab_layout(nd, d, e, m)
    slab = jnp.zeros((rows, lanes), f32)

    def put(slab, name, wmat):
        r0 = offs[name]
        rr, cc = wmat.shape
        return slab.at[r0:r0 + rr, 0:cc].set(jnp.asarray(wmat, f32))

    slab = put(slab, "W1", P["W1"])
    slab = put(slab, "W2", P["W2"])
    slab = put(slab, "We", P["We"])
    slab = put(slab, "Wqkv", wqkv)
    slab = put(slab, "Wo", P["Wo"])
    slab = put(slab, "Wm1", P["Wm1"])
    slab = put(slab, "Wm2", P["Wm2"])
    return vecs, slab.astype(bf16)


@functools.partial(jax.jit, static_argnames=("num_heads", "mlp_dim"))
def idpsam_attention_block(h, s, p, vecs, wslab, *, num_heads, mlp_dim):
    b_size, seq_l, d = h.shape
    nd = s.shape[-1]
    e = p.shape[-1]

    h_flat = h.reshape(b_size * seq_l, d)
    s_flat = s.reshape(b_size * seq_l, nd)
    p_flat = p.reshape(b_size * seq_l * seq_l, e)

    vmem = pl.BlockSpec(memory_space=pltpu.MemorySpace.VMEM)
    kernel = functools.partial(_attention_block_kernel, num_heads=num_heads,
                               b_size=b_size, seq_l=seq_l, mlp_dim=mlp_dim)
    out_flat = pl.pallas_call(
        kernel,
        out_shape=jax.ShapeDtypeStruct((b_size * seq_l, d), h.dtype),
        in_specs=[vmem] * 5,
        out_specs=vmem,
    )(h_flat, s_flat, p_flat, vecs, wslab)
    return out_flat.reshape(b_size, seq_l, d)


# ------------------------- pure-JAX reference -------------------------
def reference(h, s, p, P, num_heads):
    b_size, seq_l, d = h.shape
    hd = d // num_heads
    s_n = _ln(s) * P["gs"][0] + P["bs"][0]
    t = _silu(s_n @ P["W1"] + P["b1"][0])
    mods = t @ P["W2"] + P["b2"][0]
    (shift_msa, scale_msa, gate_msa,
     shift_mlp, scale_mlp, gate_mlp) = jnp.split(mods, 6, axis=-1)
    x = _ln(h) * (1.0 + scale_msa) + shift_msa
    p_n = _ln(p) * P["gp"][0] + P["bp"][0]
    bias = jnp.einsum("bije,eh->bijh", p_n, P["We"]) + P["be"][0]   # (B,L,L,H)
    bias = jnp.transpose(bias, (0, 3, 1, 2))                        # (B,H,Lq,Lk)

    def split_heads(z):
        return z.reshape(b_size, seq_l, num_heads, hd).transpose(0, 2, 1, 3)

    q = split_heads(x @ P["Wq"] + P["bq"][0])
    k = split_heads(x @ P["Wk"] + P["bk"][0])
    v = split_heads(x @ P["Wv"] + P["bv"][0])
    sc = jnp.einsum("bhqc,bhkc->bhqk", q, k) / math.sqrt(hd) + bias
    a = jax.nn.softmax(sc, axis=-1)
    o = jnp.einsum("bhqk,bhkc->bhqc", a, v).transpose(0, 2, 1, 3).reshape(b_size, seq_l, d)
    o = o @ P["Wo"] + P["bo"][0]
    h1 = h + o * gate_msa
    y = _ln(h1) * (1.0 + scale_mlp) + shift_mlp
    y = _silu(y @ P["Wm1"] + P["bm1"][0])
    y = y @ P["Wm2"] + P["bm2"][0]
    return h1 + y * gate_mlp


def init_params(key):
    ks = iter(jax.random.split(key, 32))

    def w(shape, scale=0.1):
        return scale * jax.random.normal(next(ks), shape, jnp.float32)

    # Biases / LayerNorm affine params stored as (1, N).
    # NOTE: ada_ln_zero=False-style init (random last adaLN layer) so the gated
    # modulation path is actually exercised (with the default zero-init the
    # block would be an identity map).
    return {
        "gs": 1.0 + 0.1 * jax.random.normal(next(ks), (1, NODE_DIM), jnp.float32),
        "bs": w((1, NODE_DIM), 0.05),
        "W1": w((NODE_DIM, NODE_DIM)),
        "b1": w((1, NODE_DIM), 0.05),
        "W2": w((NODE_DIM, 6 * TOKEN_DIM)),
        "b2": w((1, 6 * TOKEN_DIM), 0.05),
        "gp": 1.0 + 0.1 * jax.random.normal(next(ks), (1, EDGE_DIM), jnp.float32),
        "bp": w((1, EDGE_DIM), 0.05),
        "We": w((EDGE_DIM, NUM_HEADS)),
        "be": w((1, NUM_HEADS), 0.05),
        "Wq": w((TOKEN_DIM, TOKEN_DIM)),
        "bq": w((1, TOKEN_DIM), 0.05),
        "Wk": w((TOKEN_DIM, TOKEN_DIM)),
        "bk": w((1, TOKEN_DIM), 0.05),
        "Wv": w((TOKEN_DIM, TOKEN_DIM)),
        "bv": w((1, TOKEN_DIM), 0.05),
        "Wo": w((TOKEN_DIM, TOKEN_DIM)),
        "bo": w((1, TOKEN_DIM), 0.05),
        "Wm1": w((TOKEN_DIM, MLP_DIM)),
        "bm1": w((1, MLP_DIM), 0.05),
        "Wm2": w((MLP_DIM, TOKEN_DIM)),
        "bm2": w((1, TOKEN_DIM), 0.05),
    }


if __name__ == "__main__":
    key = jax.random.PRNGKey(0)
    kh, ks_, kp, kw = jax.random.split(key, 4)
    h = jax.random.normal(kh, (B, L, TOKEN_DIM), jnp.float32)
    s = jax.random.normal(ks_, (B, L, NODE_DIM), jnp.float32)
    p = jax.random.normal(kp, (B, L, L, EDGE_DIM), jnp.float32)
    params = init_params(kw)

    # Parameters are packed ONCE, outside the jitted forward, and reused.
    vecs, wslab = pack_params(params, NUM_HEADS)
    vecs, wslab = jax.block_until_ready((vecs, wslab))

    out = jax.block_until_ready(
        idpsam_attention_block(h, s, p, vecs, wslab,
                               num_heads=NUM_HEADS, mlp_dim=MLP_DIM))
    ref = jax.block_until_ready(reference(h, s, p, params, NUM_HEADS))
    np.testing.assert_allclose(np.asarray(out), np.asarray(ref), rtol=3e-2, atol=3e-2)
    print("KERNEL_OK")
</pallas_src>

<mosaic_0001>
module attributes {stable_mosaic.version = 11 : i64} {
  func.func @_attention_block_kernel(%arg0: memref<16x32xf32, #tpu.memory_space<vmem>>, %arg1: memref<16x16xf32, #tpu.memory_space<vmem>>, %arg2: memref<128x8xf32, #tpu.memory_space<vmem>>, %arg3: memref<16x128xf32, #tpu.memory_space<vmem>>, %arg4: memref<208x192xbf16, #tpu.memory_space<vmem>>, %arg5: memref<16x32xf32, #tpu.memory_space<vmem>>) attributes {dimension_semantics = [], scalar_prefetch = 0 : i64, scratch_operands = 0 : i64, tpu.core_type = #tpu.core_type<tc>} {
    %c0 = arith.constant 0 : index
    %c0_0 = arith.constant 0 : index
    %0 = vector.load %arg3[%c0, %c0_0] : memref<16x128xf32, #tpu.memory_space<vmem>>, vector<16x128xf32>
    %1 = vector.extract_strided_slice %0 {offsets = [0, 0], sizes = [1, 16], strides = [1, 1]} : vector<16x128xf32> to vector<1x16xf32>
    %2 = vector.extract_strided_slice %0 {offsets = [1, 0], sizes = [1, 16], strides = [1, 1]} : vector<16x128xf32> to vector<1x16xf32>
    %3 = vector.extract_strided_slice %0 {offsets = [2, 0], sizes = [1, 16], strides = [1, 1]} : vector<16x128xf32> to vector<1x16xf32>
    %4 = vector.extract_strided_slice %0 {offsets = [3, 0], sizes = [1, 8], strides = [1, 1]} : vector<16x128xf32> to vector<1x8xf32>
    %5 = vector.extract_strided_slice %0 {offsets = [4, 0], sizes = [1, 8], strides = [1, 1]} : vector<16x128xf32> to vector<1x8xf32>
    %6 = vector.extract_strided_slice %0 {offsets = [5, 0], sizes = [1, 4], strides = [1, 1]} : vector<16x128xf32> to vector<1x4xf32>
    %7 = vector.extract_strided_slice %0 {offsets = [6, 0], sizes = [1, 96], strides = [1, 1]} : vector<16x128xf32> to vector<1x96xf32>
    %8 = vector.extract_strided_slice %0 {offsets = [7, 0], sizes = [1, 32], strides = [1, 1]} : vector<16x128xf32> to vector<1x32xf32>
    %9 = vector.extract_strided_slice %0 {offsets = [8, 0], sizes = [1, 64], strides = [1, 1]} : vector<16x128xf32> to vector<1x64xf32>
    %10 = vector.extract_strided_slice %0 {offsets = [9, 0], sizes = [1, 32], strides = [1, 1]} : vector<16x128xf32> to vector<1x32xf32>
    %c0_1 = arith.constant 0 : index
    %c0_2 = arith.constant 0 : index
    %11 = vector.load %arg4[%c0_1, %c0_2] : memref<208x192xbf16, #tpu.memory_space<vmem>>, vector<16x16xbf16>
    %c16 = arith.constant 16 : index
    %c0_3 = arith.constant 0 : index
    %12 = vector.load %arg4[%c16, %c0_3] : memref<208x192xbf16, #tpu.memory_space<vmem>>, vector<16x192xbf16>
    %c32 = arith.constant 32 : index
    %c0_4 = arith.constant 0 : index
    %13 = vector.load %arg4[%c32, %c0_4] : memref<208x192xbf16, #tpu.memory_space<vmem>>, vector<8x4xbf16>
    %c48 = arith.constant 48 : index
    %c0_5 = arith.constant 0 : index
    %14 = vector.load %arg4[%c48, %c0_5] : memref<208x192xbf16, #tpu.memory_space<vmem>>, vector<32x96xbf16>
    %c80 = arith.constant 80 : index
    %c0_6 = arith.constant 0 : index
    %15 = vector.load %arg4[%c80, %c0_6] : memref<208x192xbf16, #tpu.memory_space<vmem>>, vector<32x32xbf16>
    %c112 = arith.constant 112 : index
    %c0_7 = arith.constant 0 : index
    %16 = vector.load %arg4[%c112, %c0_7] : memref<208x192xbf16, #tpu.memory_space<vmem>>, vector<32x64xbf16>
    %c144 = arith.constant 144 : index
    %c0_8 = arith.constant 0 : index
    %17 = vector.load %arg4[%c144, %c0_8] : memref<208x192xbf16, #tpu.memory_space<vmem>>, vector<64x32xbf16>
    %c0_9 = arith.constant 0 : index
    %c0_10 = arith.constant 0 : index
    %18 = vector.load %arg1[%c0_9, %c0_10] : memref<16x16xf32, #tpu.memory_space<vmem>>, vector<16x16xf32>
    %cst = arith.constant dense<0.000000e+00> : vector<16xf32>
    %19 = vector.multi_reduction <add>, %18, %cst [1] : vector<16x16xf32> to vector<16xf32>
    %20 = vector.shape_cast %19 : vector<16xf32> to vector<16x1xf32>
    %cst_11 = arith.constant 1.600000e+01 : f32
    %21 = vector.broadcast %cst_11 : f32 to vector<16x1xf32>
    %22 = arith.divf %20, %21 : vector<16x1xf32>
    %23 = vector.broadcast %22 : vector<16x1xf32> to vector<16x16xf32>
    %24 = arith.subf %18, %23 : vector<16x16xf32>
    %25 = arith.mulf %24, %24 : vector<16x16xf32>
    %cst_12 = arith.constant dense<0.000000e+00> : vector<16xf32>
    %26 = vector.multi_reduction <add>, %25, %cst_12 [1] : vector<16x16xf32> to vector<16xf32>
    %27 = vector.shape_cast %26 : vector<16xf32> to vector<16x1xf32>
    %cst_13 = arith.constant 1.600000e+01 : f32
    %28 = vector.broadcast %cst_13 : f32 to vector<16x1xf32>
    %29 = arith.divf %27, %28 : vector<16x1xf32>
    %30 = vector.broadcast %22 : vector<16x1xf32> to vector<16x16xf32>
    %31 = arith.subf %18, %30 : vector<16x16xf32>
    %cst_14 = arith.constant 9.99999974E-6 : f32
    %32 = vector.broadcast %cst_14 : f32 to vector<16x1xf32>
    %33 = arith.addf %29, %32 : vector<16x1xf32>
    %34 = math.rsqrt %33 : vector<16x1xf32>
    %35 = vector.broadcast %34 : vector<16x1xf32> to vector<16x16xf32>
    %36 = arith.mulf %31, %35 : vector<16x16xf32>
    %37 = vector.broadcast %1 : vector<1x16xf32> to vector<16x16xf32>
    %38 = arith.mulf %36, %37 : vector<16x16xf32>
    %39 = vector.broadcast %2 : vector<1x16xf32> to vector<16x16xf32>
    %40 = arith.addf %38, %39 : vector<16x16xf32>
    %41 = arith.truncf %40 : vector<16x16xf32> to vector<16x16xbf16>
    %cst_15 = arith.constant dense<0.000000e+00> : vector<16x16xf32>
    %42 = tpu.matmul %41, %11, %cst_15 {dimension_numbers = #tpu.dot_dimension_numbers<[1], [0], [0], [1], [0, 0, 1, 1], [], []>} : vector<16x16xbf16>, vector<16x16xbf16>, vector<16x16xf32> -> vector<16x16xf32>
    %43 = vector.broadcast %3 : vector<1x16xf32> to vector<16x16xf32>
    %44 = arith.addf %42, %43 : vector<16x16xf32>
    %45 = arith.negf %44 : vector<16x16xf32>
    %46 = math.exp %45 : vector<16x16xf32>
    %cst_16 = arith.constant 1.000000e+00 : f32
    %47 = vector.broadcast %cst_16 : f32 to vector<16x16xf32>
    %48 = arith.addf %47, %46 : vector<16x16xf32>
    %49 = arith.divf %47, %48 : vector<16x16xf32>
    %50 = arith.mulf %44, %49 : vector<16x16xf32>
    %51 = arith.truncf %50 : vector<16x16xf32> to vector<16x16xbf16>
    %cst_17 = arith.constant dense<0.000000e+00> : vector<16x192xf32>
    %52 = tpu.matmul %51, %12, %cst_17 {dimension_numbers = #tpu.dot_dimension_numbers<[1], [0], [0], [1], [0, 0, 1, 1], [], []>} : vector<16x16xbf16>, vector<16x192xbf16>, vector<16x192xf32> -> vector<16x192xf32>
    %53 = vector.extract_strided_slice %52 {offsets = [0, 0], sizes = [16, 32], strides = [1, 1]} : vector<16x192xf32> to vector<16x32xf32>
    %54 = vector.extract_strided_slice %0 {offsets = [10, 0], sizes = [1, 32], strides = [1, 1]} : vector<16x128xf32> to vector<1x32xf32>
    %55 = vector.broadcast %54 : vector<1x32xf32> to vector<16x32xf32>
    %56 = arith.addf %53, %55 : vector<16x32xf32>
    %57 = vector.extract_strided_slice %52 {offsets = [0, 32], sizes = [16, 32], strides = [1, 1]} : vector<16x192xf32> to vector<16x32xf32>
    %58 = vector.extract_strided_slice %0 {offsets = [11, 0], sizes = [1, 32], strides = [1, 1]} : vector<16x128xf32> to vector<1x32xf32>
    %59 = vector.broadcast %58 : vector<1x32xf32> to vector<16x32xf32>
    %60 = arith.addf %57, %59 : vector<16x32xf32>
    %61 = vector.extract_strided_slice %52 {offsets = [0, 64], sizes = [16, 32], strides = [1, 1]} : vector<16x192xf32> to vector<16x32xf32>
    %62 = vector.extract_strided_slice %0 {offsets = [12, 0], sizes = [1, 32], strides = [1, 1]} : vector<16x128xf32> to vector<1x32xf32>
    %63 = vector.broadcast %62 : vector<1x32xf32> to vector<16x32xf32>
    %64 = arith.addf %61, %63 : vector<16x32xf32>
    %65 = vector.extract_strided_slice %52 {offsets = [0, 96], sizes = [16, 32], strides = [1, 1]} : vector<16x192xf32> to vector<16x32xf32>
    %66 = vector.extract_strided_slice %0 {offsets = [13, 0], sizes = [1, 32], strides = [1, 1]} : vector<16x128xf32> to vector<1x32xf32>
    %67 = vector.broadcast %66 : vector<1x32xf32> to vector<16x32xf32>
    %68 = arith.addf %65, %67 : vector<16x32xf32>
    %69 = vector.extract_strided_slice %52 {offsets = [0, 128], sizes = [16, 32], strides = [1, 1]} : vector<16x192xf32> to vector<16x32xf32>
    %70 = vector.extract_strided_slice %0 {offsets = [14, 0], sizes = [1, 32], strides = [1, 1]} : vector<16x128xf32> to vector<1x32xf32>
    %71 = vector.broadcast %70 : vector<1x32xf32> to vector<16x32xf32>
    %72 = arith.addf %69, %71 : vector<16x32xf32>
    %73 = vector.extract_strided_slice %52 {offsets = [0, 160], sizes = [16, 32], strides = [1, 1]} : vector<16x192xf32> to vector<16x32xf32>
    %74 = vector.extract_strided_slice %0 {offsets = [15, 0], sizes = [1, 32], strides = [1, 1]} : vector<16x128xf32> to vector<1x32xf32>
    %75 = vector.broadcast %74 : vector<1x32xf32> to vector<16x32xf32>
    %76 = arith.addf %73, %75 : vector<16x32xf32>
    %c0_18 = arith.constant 0 : index
    %c0_19 = arith.constant 0 : index
    %77 = vector.load %arg0[%c0_18, %c0_19] : memref<16x32xf32, #tpu.memory_space<vmem>>, vector<16x32xf32>
    %cst_20 = arith.constant dense<0.000000e+00> : vector<16xf32>
    %78 = vector.multi_reduction <add>, %77, %cst_20 [1] : vector<16x32xf32> to vector<16xf32>
    %79 = vector.shape_cast %78 : vector<16xf32> to vector<16x1xf32>
    %cst_21 = arith.constant 3.200000e+01 : f32
    %80 = vector.broadcast %cst_21 : f32 to vector<16x1xf32>
    %81 = arith.divf %79, %80 : vector<16x1xf32>
    %82 = vector.broadcast %81 : vector<16x1xf32> to vector<16x32xf32>
    %83 = arith.subf %77, %82 : vector<16x32xf32>
    %84 = arith.mulf %83, %83 : vector<16x32xf32>
    %cst_22 = arith.constant dense<0.000000e+00> : vector<16xf32>
    %85 = vector.multi_reduction <add>, %84, %cst_22 [1] : vector<16x32xf32> to vector<16xf32>
    %86 = vector.shape_cast %85 : vector<16xf32> to vector<16x1xf32>
    %cst_23 = arith.constant 3.200000e+01 : f32
    %87 = vector.broadcast %cst_23 : f32 to vector<16x1xf32>
    %88 = arith.divf %86, %87 : vector<16x1xf32>
    %89 = vector.broadcast %81 : vector<16x1xf32> to vector<16x32xf32>
    %90 = arith.subf %77, %89 : vector<16x32xf32>
    %cst_24 = arith.constant 9.99999974E-6 : f32
    %91 = vector.broadcast %cst_24 : f32 to vector<16x1xf32>
    %92 = arith.addf %88, %91 : vector<16x1xf32>
    %93 = math.rsqrt %92 : vector<16x1xf32>
    %94 = vector.broadcast %93 : vector<16x1xf32> to vector<16x32xf32>
    %95 = arith.mulf %90, %94 : vector<16x32xf32>
    %cst_25 = arith.constant 1.000000e+00 : f32
    %96 = vector.broadcast %cst_25 : f32 to vector<16x32xf32>
    %97 = arith.addf %96, %60 : vector<16x32xf32>
    %98 = arith.mulf %95, %97 : vector<16x32xf32>
    %99 = arith.addf %98, %56 : vector<16x32xf32>
    %c0_26 = arith.constant 0 : index
    %c0_27 = arith.constant 0 : index
    %100 = vector.load %arg2[%c0_26, %c0_27] : memref<128x8xf32, #tpu.memory_space<vmem>>, vector<128x8xf32>
    %cst_28 = arith.constant dense<0.000000e+00> : vector<128xf32>
    %101 = vector.multi_reduction <add>, %100, %cst_28 [1] : vector<128x8xf32> to vector<128xf32>
    %102 = vector.shape_cast %101 : vector<128xf32> to vector<128x1xf32>
    %cst_29 = arith.constant 8.000000e+00 : f32
    %103 = vector.broadcast %cst_29 : f32 to vector<128x1xf32>
    %104 = arith.divf %102, %103 : vector<128x1xf32>
    %105 = vector.broadcast %104 : vector<128x1xf32> to vector<128x8xf32>
    %106 = arith.subf %100, %105 : vector<128x8xf32>
    %107 = arith.mulf %106, %106 : vector<128x8xf32>
    %cst_30 = arith.constant dense<0.000000e+00> : vector<128xf32>
    %108 = vector.multi_reduction <add>, %107, %cst_30 [1] : vector<128x8xf32> to vector<128xf32>
    %109 = vector.shape_cast %108 : vector<128xf32> to vector<128x1xf32>
    %cst_31 = arith.constant 8.000000e+00 : f32
    %110 = vector.broadcast %cst_31 : f32 to vector<128x1xf32>
    %111 = arith.divf %109, %110 : vector<128x1xf32>
    %112 = vector.broadcast %104 : vector<128x1xf32> to vector<128x8xf32>
    %113 = arith.subf %100, %112 : vector<128x8xf32>
    %cst_32 = arith.constant 9.99999974E-6 : f32
    %114 = vector.broadcast %cst_32 : f32 to vector<128x1xf32>
    %115 = arith.addf %111, %114 : vector<128x1xf32>
    %116 = math.rsqrt %115 : vector<128x1xf32>
    %117 = vector.broadcast %116 : vector<128x1xf32> to vector<128x8xf32>
    %118 = arith.mulf %113, %117 : vector<128x8xf32>
    %119 = vector.broadcast %4 : vector<1x8xf32> to vector<128x8xf32>
    %120 = arith.mulf %118, %119 : vector<128x8xf32>
    %121 = vector.broadcast %5 : vector<1x8xf32> to vector<128x8xf32>
    %122 = arith.addf %120, %121 : vector<128x8xf32>
    %123 = arith.truncf %122 : vector<128x8xf32> to vector<128x8xbf16>
    %cst_33 = arith.constant dense<0.000000e+00> : vector<128x4xf32>
    %124 = tpu.matmul %123, %13, %cst_33 {dimension_numbers = #tpu.dot_dimension_numbers<[1], [0], [0], [1], [0, 0, 1, 1], [], []>} : vector<128x8xbf16>, vector<8x4xbf16>, vector<128x4xf32> -> vector<128x4xf32>
    %125 = vector.broadcast %6 : vector<1x4xf32> to vector<128x4xf32>
    %126 = arith.addf %124, %125 : vector<128x4xf32>
    %127 = vector.shape_cast %126 : vector<128x4xf32> to vector<2x8x8x4xf32>
    %128 = vector.extract_strided_slice %127 {offsets = [0, 0, 0, 0], sizes = [2, 8, 8, 1], strides = [1, 1, 1, 1]} : vector<2x8x8x4xf32> to vector<2x8x8x1xf32>
    %129 = vector.shape_cast %128 : vector<2x8x8x1xf32> to vector<2x8x8xf32>
    %130 = vector.extract_strided_slice %127 {offsets = [0, 0, 0, 1], sizes = [2, 8, 8, 1], strides = [1, 1, 1, 1]} : vector<2x8x8x4xf32> to vector<2x8x8x1xf32>
    %131 = vector.shape_cast %130 : vector<2x8x8x1xf32> to vector<2x8x8xf32>
    %132 = vector.extract_strided_slice %127 {offsets = [0, 0, 0, 2], sizes = [2, 8, 8, 1], strides = [1, 1, 1, 1]} : vector<2x8x8x4xf32> to vector<2x8x8x1xf32>
    %133 = vector.shape_cast %132 : vector<2x8x8x1xf32> to vector<2x8x8xf32>
    %134 = vector.extract_strided_slice %127 {offsets = [0, 0, 0, 3], sizes = [2, 8, 8, 1], strides = [1, 1, 1, 1]} : vector<2x8x8x4xf32> to vector<2x8x8x1xf32>
    %135 = vector.shape_cast %134 : vector<2x8x8x1xf32> to vector<2x8x8xf32>
    %136 = tpu.concatenate %129, %131, %133, %135 in 0 : vector<2x8x8xf32>, vector<2x8x8xf32>, vector<2x8x8xf32>, vector<2x8x8xf32> -> vector<8x8x8xf32>
    %137 = arith.truncf %99 : vector<16x32xf32> to vector<16x32xbf16>
    %cst_34 = arith.constant dense<0.000000e+00> : vector<16x96xf32>
    %138 = tpu.matmul %137, %14, %cst_34 {dimension_numbers = #tpu.dot_dimension_numbers<[1], [0], [0], [1], [0, 0, 1, 1], [], []>} : vector<16x32xbf16>, vector<32x96xbf16>, vector<16x96xf32> -> vector<16x96xf32>
    %139 = vector.broadcast %7 : vector<1x96xf32> to vector<16x96xf32>
    %140 = arith.addf %138, %139 : vector<16x96xf32>
    %141 = vector.extract_strided_slice %140 {offsets = [0, 0], sizes = [16, 24], strides = [1, 1]} : vector<16x96xf32> to vector<16x24xf32>
    %142 = vector.extract_strided_slice %140 {offsets = [0, 24], sizes = [16, 24], strides = [1, 1]} : vector<16x96xf32> to vector<16x24xf32>
    %143 = vector.extract_strided_slice %140 {offsets = [0, 48], sizes = [16, 24], strides = [1, 1]} : vector<16x96xf32> to vector<16x24xf32>
    %144 = vector.extract_strided_slice %140 {offsets = [0, 72], sizes = [16, 24], strides = [1, 1]} : vector<16x96xf32> to vector<16x24xf32>
    %145 = tpu.concatenate %141, %142, %143, %144 in 0 : vector<16x24xf32>, vector<16x24xf32>, vector<16x24xf32>, vector<16x24xf32> -> vector<64x24xf32>
    %146 = vector.shape_cast %145 : vector<64x24xf32> to vector<8x8x24xf32>
    %147 = vector.extract_strided_slice %146 {offsets = [0, 0, 0], sizes = [8, 8, 8], strides = [1, 1, 1]} : vector<8x8x24xf32> to vector<8x8x8xf32>
    %148 = vector.extract_strided_slice %146 {offsets = [0, 0, 8], sizes = [8, 8, 8], strides = [1, 1, 1]} : vector<8x8x24xf32> to vector<8x8x8xf32>
    %149 = vector.extract_strided_slice %146 {offsets = [0, 0, 16], sizes = [8, 8, 8], strides = [1, 1, 1]} : vector<8x8x24xf32> to vector<8x8x8xf32>
    %150 = arith.truncf %147 : vector<8x8x8xf32> to vector<8x8x8xbf16>
    %151 = arith.truncf %148 : vector<8x8x8xf32> to vector<8x8x8xbf16>
    %cst_35 = arith.constant dense<0.000000e+00> : vector<8x8x8xf32>
    %152 = tpu.matmul %150, %151, %cst_35 {dimension_numbers = #tpu.dot_dimension_numbers<[2], [2], [1], [1], [0, 0, 0, 1, 1, 1], [0], [0]>} : vector<8x8x8xbf16>, vector<8x8x8xbf16>, vector<8x8x8xf32> -> vector<8x8x8xf32>
    %153 = arith.addf %152, %136 : vector<8x8x8xf32>
    %cst_36 = arith.constant dense<0xFF800000> : vector<8x8xf32>
    %154 = vector.multi_reduction <maximumf>, %153, %cst_36 [2] : vector<8x8x8xf32> to vector<8x8xf32>
    %155 = vector.shape_cast %154 : vector<8x8xf32> to vector<8x8x1xf32>
    %156 = vector.broadcast %155 : vector<8x8x1xf32> to vector<8x8x8xf32>
    %157 = arith.subf %153, %156 : vector<8x8x8xf32>
    %158 = math.exp %157 : vector<8x8x8xf32>
    %cst_37 = arith.constant dense<0.000000e+00> : vector<8x8xf32>
    %159 = vector.multi_reduction <add>, %158, %cst_37 [2] : vector<8x8x8xf32> to vector<8x8xf32>
    %160 = vector.shape_cast %159 : vector<8x8xf32> to vector<8x8x1xf32>
    %161 = tpu.reciprocal %160 {approx = true} : vector<8x8x1xf32> -> vector<8x8x1xf32>
    %162 = vector.broadcast %161 : vector<8x8x1xf32> to vector<8x8x8xf32>
    %163 = arith.mulf %158, %162 : vector<8x8x8xf32>
    %164 = arith.truncf %163 : vector<8x8x8xf32> to vector<8x8x8xbf16>
    %165 = arith.truncf %149 : vector<8x8x8xf32> to vector<8x8x8xbf16>
    %cst_38 = arith.constant dense<0.000000e+00> : vector<8x8x8xf32>
    %166 = tpu.matmul %164, %165, %cst_38 {dimension_numbers = #tpu.dot_dimension_numbers<[2], [1], [1], [2], [0, 0, 0, 1, 1, 2], [0], [0]>} : vector<8x8x8xbf16>, vector<8x8x8xbf16>, vector<8x8x8xf32> -> vector<8x8x8xf32>
    %167 = vector.extract_strided_slice %166 {offsets = [0, 0, 0], sizes = [2, 8, 8], strides = [1, 1, 1]} : vector<8x8x8xf32> to vector<2x8x8xf32>
    %168 = vector.extract_strided_slice %166 {offsets = [2, 0, 0], sizes = [2, 8, 8], strides = [1, 1, 1]} : vector<8x8x8xf32> to vector<2x8x8xf32>
    %169 = vector.extract_strided_slice %166 {offsets = [4, 0, 0], sizes = [2, 8, 8], strides = [1, 1, 1]} : vector<8x8x8xf32> to vector<2x8x8xf32>
    %170 = vector.extract_strided_slice %166 {offsets = [6, 0, 0], sizes = [2, 8, 8], strides = [1, 1, 1]} : vector<8x8x8xf32> to vector<2x8x8xf32>
    %171 = tpu.concatenate %167, %168, %169, %170 in 2 : vector<2x8x8xf32>, vector<2x8x8xf32>, vector<2x8x8xf32>, vector<2x8x8xf32> -> vector<2x8x32xf32>
    %172 = vector.shape_cast %171 : vector<2x8x32xf32> to vector<16x32xf32>
    %173 = arith.truncf %172 : vector<16x32xf32> to vector<16x32xbf16>
    %cst_39 = arith.constant dense<0.000000e+00> : vector<16x32xf32>
    %174 = tpu.matmul %173, %15, %cst_39 {dimension_numbers = #tpu.dot_dimension_numbers<[1], [0], [0], [1], [0, 0, 1, 1], [], []>} : vector<16x32xbf16>, vector<32x32xbf16>, vector<16x32xf32> -> vector<16x32xf32>
    %175 = vector.broadcast %8 : vector<1x32xf32> to vector<16x32xf32>
    %176 = arith.addf %174, %175 : vector<16x32xf32>
    %177 = arith.mulf %176, %64 : vector<16x32xf32>
    %178 = arith.addf %77, %177 : vector<16x32xf32>
    %cst_40 = arith.constant dense<0.000000e+00> : vector<16xf32>
    %179 = vector.multi_reduction <add>, %178, %cst_40 [1] : vector<16x32xf32> to vector<16xf32>
    %180 = vector.shape_cast %179 : vector<16xf32> to vector<16x1xf32>
    %cst_41 = arith.constant 3.200000e+01 : f32
    %181 = vector.broadcast %cst_41 : f32 to vector<16x1xf32>
    %182 = arith.divf %180, %181 : vector<16x1xf32>
    %183 = vector.broadcast %182 : vector<16x1xf32> to vector<16x32xf32>
    %184 = arith.subf %178, %183 : vector<16x32xf32>
    %185 = arith.mulf %184, %184 : vector<16x32xf32>
    %cst_42 = arith.constant dense<0.000000e+00> : vector<16xf32>
    %186 = vector.multi_reduction <add>, %185, %cst_42 [1] : vector<16x32xf32> to vector<16xf32>
    %187 = vector.shape_cast %186 : vector<16xf32> to vector<16x1xf32>
    %cst_43 = arith.constant 3.200000e+01 : f32
    %188 = vector.broadcast %cst_43 : f32 to vector<16x1xf32>
    %189 = arith.divf %187, %188 : vector<16x1xf32>
    %190 = vector.broadcast %182 : vector<16x1xf32> to vector<16x32xf32>
    %191 = arith.subf %178, %190 : vector<16x32xf32>
    %cst_44 = arith.constant 9.99999974E-6 : f32
    %192 = vector.broadcast %cst_44 : f32 to vector<16x1xf32>
    %193 = arith.addf %189, %192 : vector<16x1xf32>
    %194 = math.rsqrt %193 : vector<16x1xf32>
    %195 = vector.broadcast %194 : vector<16x1xf32> to vector<16x32xf32>
    %196 = arith.mulf %191, %195 : vector<16x32xf32>
    %cst_45 = arith.constant 1.000000e+00 : f32
    %197 = vector.broadcast %cst_45 : f32 to vector<16x32xf32>
    %198 = arith.addf %197, %72 : vector<16x32xf32>
    %199 = arith.mulf %196, %198 : vector<16x32xf32>
    %200 = arith.addf %199, %68 : vector<16x32xf32>
    %201 = arith.truncf %200 : vector<16x32xf32> to vector<16x32xbf16>
    %cst_46 = arith.constant dense<0.000000e+00> : vector<16x64xf32>
    %202 = tpu.matmul %201, %16, %cst_46 {dimension_numbers = #tpu.dot_dimension_numbers<[1], [0], [0], [1], [0, 0, 1, 1], [], []>} : vector<16x32xbf16>, vector<32x64xbf16>, vector<16x64xf32> -> vector<16x64xf32>
    %203 = vector.broadcast %9 : vector<1x64xf32> to vector<16x64xf32>
    %204 = arith.addf %202, %203 : vector<16x64xf32>
    %205 = arith.negf %204 : vector<16x64xf32>
    %206 = math.exp %205 : vector<16x64xf32>
    %cst_47 = arith.constant 1.000000e+00 : f32
    %207 = vector.broadcast %cst_47 : f32 to vector<16x64xf32>
    %208 = arith.addf %207, %206 : vector<16x64xf32>
    %209 = arith.divf %207, %208 : vector<16x64xf32>
    %210 = arith.mulf %204, %209 : vector<16x64xf32>
    %211 = arith.truncf %210 : vector<16x64xf32> to vector<16x64xbf16>
    %cst_48 = arith.constant dense<0.000000e+00> : vector<16x32xf32>
    %212 = tpu.matmul %211, %17, %cst_48 {dimension_numbers = #tpu.dot_dimension_numbers<[1], [0], [0], [1], [0, 0, 1, 1], [], []>} : vector<16x64xbf16>, vector<64x32xbf16>, vector<16x32xf32> -> vector<16x32xf32>
    %213 = vector.broadcast %10 : vector<1x32xf32> to vector<16x32xf32>
    %214 = arith.addf %212, %213 : vector<16x32xf32>
    %215 = arith.mulf %214, %76 : vector<16x32xf32>
    %216 = arith.addf %178, %215 : vector<16x32xf32>
    %c0_49 = arith.constant 0 : index
    %c0_50 = arith.constant 0 : index
    %217 = vector.load %arg5[%c0_49, %c0_50] : memref<16x32xf32, #tpu.memory_space<vmem>>, vector<16x32xf32>
    tpu.vector_store %arg5[%c0_49, %c0_50], %216 {strides = array<i32>} : memref<16x32xf32, #tpu.memory_space<vmem>>, vector<16x32xf32>,
    return
  }
}

</mosaic_0001>

<bundles_post_ra>
// kernel: idpsam_attention_block.1
= control target key start
LH: loop header
LB: loop body
LE: loop exit
PB: predicated region body
PF: predicated region fallthrough
CT: control target
= control target key end

     0   :  { %vm51_vm0 = vcmask 130048   ;;  %s4182_s0 = inlined_call_operand.vmem [shape: f32[16,32], index: 0, kind: input, shape index: {}]   ;;  %s4183_s1 = inlined_call_operand.vmem [shape: f32[16,16], index: 1, kind: input, shape index: {}]   ;;  %s4184_s2 = inlined_call_operand.vmem [shape: f32[128,8], index: 2, kind: input, shape index: {}]   ;;  %s4185_s3 = inlined_call_operand.vmem [shape: f32[16,128], index: 3, kind: input, shape index: {}]   ;;  %s4186_s4 = inlined_call_operand.vmem [shape: bf16[208,192], index: 4, kind: input, shape index: {}]   ;;  %s4187_s5 = inlined_call_operand.hbm [shape: f32[16,32], index: 5, kind: output, shape index: {}]  }
   0x1   :  { %v49_v0 = vld [vmem:[%s4183_s1] sm:$0xff]  ;;  %v50_v1 = vld [vmem:[%s4183_s1 + $0x8] sm:$0xff] }
   0x2   :  { %v52_v2 = vsel %vm51_vm0, %v49_v0, 0.0  ;;  %v55_v3 = vsel %vm51_vm0, %v50_v1, 0.0 }
   0x3   :  { %53 = vadd.xlane.f32.xlu0 %v52_v2 }
   0x7   :  { %56 = vadd.xlane.f32.xlu0 %v55_v3 }
   0x8   :  { %10 = vsyncpa [#allocation3], 0  ;;  %v2945_v14 = vld [vmem:[%s4186_s4] ss:$8 sps:$4 sm:$0xff]   ;;  %v3077_v15 = vmov 0.0   ;;  %vm3078_vm1 = vmmov 0   ;;  %v79_v26 = vlaneseq }
   0x9   :  { %2737 = vmatprep.subr.bf16.mxu0 %v3077_v15  ;;  %2739 = vmatprep.mubr.msk.bf16.mxu0 %vm3078_vm1, %v3077_v15  ;;  %v269_v16 = vld [vmem:[%s4182_s0] sm:$0xff]  ;;  %vm271_vm2 = vcmask 261120   ;;  %v270_v17 = vld [vmem:[%s4182_s0 + $0x8] sm:$0xff]  ;;  %v2946_v42 = vld [vmem:[%s4186_s4 + $0x14] ss:$8 sps:$4 sm:$0xff]   ;;  %v3079_v45 = vmov 0  }
   0xa   :  { %2738 = vmatpush3.bf16.msra.mxu0 %v2945_v14  ;;  %v272_v18 = vsel %vm271_vm2, %v269_v16, 0.0  ;;  %v275_v19 = vsel %vm271_vm2, %v270_v17, 0.0  ;;  %v3151_v27 = vshrl.u32 %v79_v26, 7  ;;  %v3157_v29 = vld [vmem:[%s4185_s3] sm:$0xff]  ;;  %v2948_v43 = vld [vmem:[%s4186_s4 + $0x10] ss:$8 sps:$4 sm:$0xff]   ;;  %188 = vmatprep.subr.bf16.mxu1 %v2946_v42 }
   0xb   :  { %273 = vadd.xlane.f32.xlu0 %v272_v18  ;;  %189 = vmatpush1.bf16.msra.mxu1 %v2948_v43  ;;  %v3177_v44 = vld [vmem:[%s4185_s3 + $0x8] sm:$0xff]  ;;  %s3080_s10 = smov 32   ;;  %v2950_v14 = vld [vmem:[%s4186_s4 + $0x30] ss:$8 sps:$4 sm:$0xff]   ;;  %s3081_s15 = smov 96   ;;  %vm329_vm3 = vcmask 64512  }
   0xc   :  { %v81_v28 = vsub.s32 0, %v3151_v27  ;;  %v87_v33 = vsub.s32 1, %v3151_v27  ;;  %2761 = vmatprep.subr.bf16.mxu1 %v3077_v15  ;;  %206 = vmatprep.mubr.bf16.mxu1 %v3079_v45  ;;  %v225_v48 = vsub.s32 3, %v3151_v27  ;;  %v94_v58 = vsub.s32 2, %v3151_v27  ;;  %v3269_v42 = vld [vmem:[%s4184_s2 + $0x40] sm:$0xff]  ;;  %s3082_s24 = smov 80  }
   0xd   :  { %2928 = vset.pattern.permute.xlu0 %v3079_v45  ;;  %2929 = vset.pattern.permute.xlu1 %v3079_v45  ;;  %v3276_v45 = vld [vmem:[%s4184_s2 + $0x38] sm:$0xff]  ;;  %vm615_vm4 = vcmask 1043456   ;;  %s3083_s25 = smov 104   ;;  %s3084_s26 = smov 56   ;;  %vm980_vm5 = vcmask 1042434   ;;  %vm978_vm6 = vcmask 1041409  }
   0xe   :  { %v82_v32 = vrot.slane %v3157_v29, %v81_v28  ;;  %v88_v37 = vrot.slane %v3157_v29, %v87_v33  ;;  %v226_v51 = vrot.slane %v3177_v44, %v225_v48  ;;  %v95_v59 = vrot.slane %v3157_v29, %v94_v58  ;;  %s3085_s27 = smov 120   ;;  %s3086_s28 = smov 127  }
   0xf   :  { %s3087_s29 = smov 126   ;;  %s3088_s30 = smov 125   ;;  %vm982_vm7 = vcmask 1043459   ;;  %vm984_vm8 = vcmask 1044484   ;;  %vm986_vm9 = vcmask 1045509   ;;  %vm988_vm10 = vcmask 1046534  }
  0x10   :  { %s3089_s6 = smov 112   ;;  %vm990_vm11 = vcmask 1047559   ;;  %s3090_s7 = smov 8   ;;  %vm2338_vm12 = vcmask 195584   ;;  %vm2558_vm13 = vcmask 523264  }
  0x11   :  { %s3091_s13 = smov 16   ;;  %s3092_s17 = smov 64  }
  0x12   :  { %s3093_s18 = smov 24  }
  0x21   :  { %228 = vrot.lane.b32.xlu0 %v226_v51, %s3080_s10 }
  0x8c   :  { %v54_v4 = vpop.xlane.xlu0 %53 }
  0x8d   :  { %v59_v5 = vmul.f32 0.0625, %v54_v4 }
  0x8f   :  { %v61_v6 = vsub.f32 %v49_v0, %v59_v5 }
  0x90   :  { %v57_v7 = vpop.xlane.xlu0 %56 }
  0x91   :  { %v60_v8 = vmul.f32 0.0625, %v57_v7  ;;  %v63_v9 = vmul.f32 %v61_v6, %v61_v6 }
  0x93   :  { %v62_v10 = vsub.f32 %v50_v1, %v60_v8  ;;  %v65_v11 = vsel %vm51_vm0, %v63_v9, 0.0 }
  0x94   :  { %66 = vadd.xlane.f32.xlu1 %v65_v11  ;;  %v274_v46 = vpop.xlane.xlu0 %273 }
  0x95   :  { %v64_v12 = vmul.f32 %v62_v10, %v62_v10  ;;  %v279_v49 = vmul.f32 0.03125, %v274_v46  ;;  %v354_v46 = vsel %vm329_vm3, %v3269_v42, 0.0 }
  0x97   :  { %v68_v13 = vsel %vm51_vm0, %v64_v12, 0.0  ;;  %v3183_v52 = vsub.f32 %v269_v16, %v279_v49  ;;  %v351_v49 = vsel %vm329_vm3, %v3276_v45, 0.0 }
  0x98   :  { %69 = vadd.xlane.f32.xlu1 %v68_v13  ;;  %v2949_v13 = vld [vmem:[%s4186_s4 + $0x40] ss:$8 sps:$4 sm:$0xff]   ;;  %v229_v16 = vpop.permute.xlu0 %228 }
  0x99   :  { %v283_v54 = vmul.f32 %v3183_v52, %v3183_v52 }
  0x9b   :  { %v285_v56 = vsel %vm271_vm2, %v283_v54, 0.0  ;;  %v3297_v54 = vld [vmem:[%s4184_s2 + $0x60] sm:$0xff] }
  0x9c   :  { %276 = vadd.xlane.f32.xlu1 %v275_v19 }
  0xa0   :  { %286 = vadd.xlane.f32.xlu1 %v285_v56  ;;  %v3304_v56 = vld [vmem:[%s4184_s2 + $0x58] sm:$0xff] }
 0x11d   :  { %v67_v20 = vpop.xlane.xlu1 %66 }
 0x11e   :  { %v71_v21 = vmul.f32 0.0625, %v67_v20 }
 0x120   :  { %v73_v22 = vadd.f32 1e-05, %v71_v21 }
 0x121   :  { %v70_v23 = vpop.xlane.xlu1 %69 }
 0x122   :  { %2959 = vrsqrt.f32 %v73_v22  ;;  %v72_v24 = vmul.f32 0.0625, %v70_v23 }
 0x124   :  { %v74_v25 = vadd.f32 1e-05, %v72_v24  ;;  %v3222_v24 = vld [vmem:[%s4184_s2 + $0x8] sm:$0xff] }
 0x125   :  { %v277_v47 = vpop.xlane.xlu1 %276 }
 0x126   :  { %2961 = vrsqrt.f32 %v74_v25  ;;  %v280_v50 = vmul.f32 0.03125, %v277_v47  ;;  %v3227_v25 = vld [vmem:[%s4184_s2] sm:$0xff]  ;;  %v3283_v47 = vld [vmem:[%s4184_s2 + $0x50] sm:$0xff] }
 0x127   :  { %v360_v51 = vsel %vm329_vm3, %v3283_v47, 0.0 }
 0x128   :  { %v3185_v53 = vsub.f32 %v270_v17, %v280_v50  ;;  %v3290_v50 = vld [vmem:[%s4184_s2 + $0x48] sm:$0xff] }
 0x12a   :  { %v284_v55 = vmul.f32 %v3185_v53, %v3185_v53 }
 0x12c   :  { %v288_v57 = vsel %vm271_vm2, %v284_v55, 0.0  ;;  %v357_v55 = vsel %vm329_vm3, %v3290_v50, 0.0 }
 0x12d   :  { %289 = vadd.xlane.f32.xlu1 %v288_v57  ;;  %v366_v57 = vsel %vm329_vm3, %v3297_v54, 0.0 }
 0x12f   :  { %v2960_v30 = vpop.eup %2959 }
 0x130   :  { %v77_v31 = vmul.f32 %v2960_v30, %v61_v6  ;;  %v333_v30 = vsel %vm329_vm3, %v3222_v24, 0.0 }
 0x132   :  { %v83_v36 = vmul.f32 %v82_v32, %v77_v31  ;;  %v330_v31 = vsel %vm329_vm3, %v3227_v25, 0.0 }
 0x133   :  { %v2962_v34 = vpop.eup %2961 }
 0x134   :  { %v78_v35 = vmul.f32 %v2962_v34, %v62_v10  ;;  %v89_v39 = vadd.f32 %v88_v37, %v83_v36  ;;  %v3241_v34 = vld [vmem:[%s4184_s2 + $0x20] sm:$0xff]  ;;  %v3248_v36 = vld [vmem:[%s4184_s2 + $0x18] sm:$0xff] }
 0x136   :  { %v84_v38 = vmul.f32 %v82_v32, %v78_v35  ;;  %v3236_v32 = vld [vmem:[%s4184_s2 + $0x10] sm:$0xff] }
 0x137   :  { %v336_v35 = vsel %vm329_vm3, %v3236_v32, 0.0 }
 0x138   :  { %v90_v40 = vadd.f32 %v88_v37, %v84_v38  ;;  %v342_v37 = vsel %vm329_vm3, %v3241_v34, 0.0  ;;  %v3255_v38 = vld [vmem:[%s4184_s2 + $0x30] sm:$0xff] }
 0x13a   :  { %v91_v41 = vpack.c.bf16 %v90_v40, %v89_v39  ;;  %v339_v39 = vsel %vm329_vm3, %v3248_v36, 0.0  ;;  %v3262_v40 = vld [vmem:[%s4184_s2 + $0x28] sm:$0xff] }
 0x13b   :  { %v345_v43 = vsel %vm329_vm3, %v3262_v40, 0.0 }
 0x13c   :  { %2740 = vmatmul.mubr.msk.bf16.vlgmr.msra.gmra.mxu0 %vm51_vm0, %v91_v41  ;;  %v348_v41 = vsel %vm329_vm3, %v3255_v38, 0.0 }
 0x1fc   :  { %v139_v60 = vpop.f32.mrf.mxu0 }
 0x1fd   :  { %v140_v61 = vadd.f32 %v139_v60, %v95_v59  ;;  %v363_v60 = vsel %vm329_vm3, %v3304_v56, 0.0 }
 0x1fe   :  { %v2741_v62 = vpop.f32.mrf.mxu0 }
 0x1ff   :  { %v2635_v63 = vmul.f32 -1.442695, %v140_v61 }
 0x200   :  { %v142_v0 = vpop.f32.mrf.mxu0 }
 0x201   :  { %2963 = vpow2.f32 %v2635_v63  ;;  %v143_v1 = vadd.f32 %v142_v0, %v95_v59  ;;  %v3311_v59 = vld [vmem:[%s4184_s2 + $0x70] sm:$0xff]  ;;  %v3327_v0 = vld [vmem:[%s4184_s2 + $0x78] sm:$0xff] }
 0x202   :  { %v2742_v2 = vpop.f32.mrf.mxu0  ;;  %v372_v62 = vsel %vm329_vm3, %v3311_v59, 0.0 }
 0x203   :  { %v2636_v3 = vmul.f32 -1.442695, %v143_v1  ;;  %v287_v2 = vpop.xlane.xlu1 %286 }
 0x205   :  { %2965 = vpow2.f32 %v2636_v3 }
 0x207   :  { %v290_v3 = vpop.xlane.xlu1 %289 }
 0x20e   :  { %v2964_v4 = vpop.eup %2963 }
 0x20f   :  { %v152_v5 = vadd.f32 1.0, %v2964_v4  ;;  %v291_v4 = vmul.f32 0.03125, %v287_v2 }
 0x211   :  { %2967 = vrcp.f32 %v152_v5  ;;  %v292_v5 = vmul.f32 0.03125, %v290_v3 }
 0x212   :  { %v2966_v6 = vpop.eup %2965 }
 0x213   :  { %v153_v7 = vadd.f32 1.0, %v2966_v6  ;;  %v293_v6 = vadd.f32 1e-05, %v291_v4 }
 0x215   :  { %2969 = vrcp.f32 %v153_v7  ;;  %v294_v7 = vadd.f32 1e-05, %v292_v5 }
 0x216   :  { %2971 = vrsqrt.f32 %v293_v6 }
 0x217   :  { %2973 = vrsqrt.f32 %v294_v7 }
 0x21e   :  { %v2968_v8 = vpop.eup %2967 }
 0x21f   :  { %v158_v10 = vmul.f32 %v2968_v8, %v140_v61  ;;  %v3318_v61 = vld [vmem:[%s4184_s2 + $0x68] sm:$0xff] }
 0x220   :  { %v369_v63 = vsel %vm329_vm3, %v3318_v61, 0.0 }
 0x222   :  { %v2970_v9 = vpop.eup %2969 }
 0x223   :  { %v159_v11 = vmul.f32 %v2970_v9, %v143_v1  ;;  %v375_v1 = vsel %vm329_vm3, %v3327_v0, 0.0  ;;  %v2972_v8 = vpop.eup %2971 }
 0x224   :  { %v2974_v9 = vpop.eup %2973 }
 0x225   :  { %v160_v12 = vpack.c.bf16 %v159_v11, %v158_v10  ;;  %v220_v11 = vrot.slane %v3177_v44, %v94_v58 }
 0x227   :  { %2639 = vmatmul.mubr.msk.bf16.vlgmr.msra.gmra.mxu1 %vm51_vm0, %v160_v12  ;;  %v297_v12 = vmul.f32 %v2972_v8, %v3183_v52 }
 0x228   :  { %2765 = vmatprep.mubr.msk.bf16.mxu1 %vm3078_vm1, %v3077_v15  ;;  %2762 = vmatpush3.bf16.msra.mxu1 %v2949_v13 }
 0x229   :  { %2763 = vmatprep.subr.bf16.mxu1 %v3077_v15 }
 0x22c   :  { %2764 = vmatpush3.bf16.msra.mxu1 %v2950_v14  ;;  %v298_v14 = vmul.f32 %v2974_v9, %v3185_v53 }
 0x22d   :  { %2769 = vmatprep.subr.bf16.mxu1 %v3077_v15 }
 0x2e7   :  { %v3208_v17 = vpop.f32.mrf.mxu1 }
 0x2e8   :  { %v231_v18 = vadd.f32 %v229_v16, %v3208_v17 }
 0x2e9   :  { %v3212_v19 = vpop.f32.mrf.mxu1 }
 0x2ea   :  { %v299_v20 = vadd.f32 1.0, %v231_v18  ;;  %v221_v18 = vadd.f32 %v220_v11, %v3208_v17 }
 0x2eb   :  { %v3214_v21 = vpop.f32.mrf.mxu1 }
 0x2ec   :  { %303 = vrot.lane.b32.xlu1 %v299_v20, %s3081_s15  ;;  %v232_v22 = vadd.f32 %v229_v16, %v3214_v21  ;;  %v222_v20 = vadd.f32 %v220_v11, %v3214_v21 }
 0x2ee   :  { %v300_v23 = vadd.f32 1.0, %v232_v22 }
 0x2f0   :  { %305 = vrot.lane.b32.xlu0 %v300_v23, %s3081_s15 }
 0x30f   :  { %334 = vadd.xlane.f32.xlu0 %v333_v30 }
 0x310   :  { %331 = vadd.xlane.f32.xlu1 %v330_v31 }
 0x313   :  { %337 = vadd.xlane.f32.xlu0 %v336_v35 }
 0x314   :  { %343 = vadd.xlane.f32.xlu1 %v342_v37 }
 0x317   :  { %340 = vadd.xlane.f32.xlu0 %v339_v39 }
 0x318   :  { %349 = vadd.xlane.f32.xlu1 %v348_v41 }
 0x31b   :  { %346 = vadd.xlane.f32.xlu0 %v345_v43 }
 0x31c   :  { %355 = vadd.xlane.f32.xlu1 %v354_v46 }
 0x31f   :  { %352 = vadd.xlane.f32.xlu0 %v351_v49 }
 0x320   :  { %361 = vadd.xlane.f32.xlu1 %v360_v51 }
 0x323   :  { %358 = vadd.xlane.f32.xlu0 %v357_v55 }
 0x324   :  { %367 = vadd.xlane.f32.xlu1 %v366_v57 }
 0x327   :  { %364 = vadd.xlane.f32.xlu0 %v363_v60 }
 0x328   :  { %373 = vadd.xlane.f32.xlu1 %v372_v62 }
 0x32b   :  { %370 = vadd.xlane.f32.xlu0 %v369_v63 }
 0x32f   :  { %376 = vadd.xlane.f32.xlu0 %v375_v1 }
 0x35e   :  { %v304_v10 = vpop.permute.xlu1 %303 }
 0x35f   :  { %v309_v13 = vmul.f32 %v304_v10, %v297_v12 }
 0x361   :  { %v311_v23 = vadd.f32 %v309_v13, %v221_v18 }
 0x362   :  { %v306_v16 = vpop.permute.xlu0 %305 }
 0x363   :  { %v310_v22 = vmul.f32 %v306_v16, %v298_v14 }
 0x365   :  { %v312_v30 = vadd.f32 %v310_v22, %v222_v20 }
 0x367   :  { %v828_v31 = vpack.c.bf16 %v312_v30, %v311_v23 }
 0x369   :  { %2766 = vmatmul.mubr.msk.bf16.vlgmr.msra.gmra.mxu1 %vm271_vm2, %v828_v31 }
 0x36a   :  { %2771 = vmatprep.mubr.msk.bf16.mxu1 %vm3078_vm1, %v3077_v15 }
 0x398   :  { %v335_v44 = vpop.xlane.xlu0 %334 }
 0x399   :  { %v380_v58 = vmul.f32 0.125, %v335_v44  ;;  %v332_v52 = vpop.xlane.xlu1 %331 }
 0x39a   :  { %v379_v35 = vmul.f32 0.125, %v332_v52 }
 0x39b   :  { %v3342_v53 = vsub.f32 %v3222_v24, %v380_v58 }
 0x39c   :  { %v3345_v37 = vsub.f32 %v3227_v25, %v379_v35  ;;  %v338_v39 = vpop.xlane.xlu0 %337 }
 0x39d   :  { %v381_v41 = vmul.f32 0.125, %v338_v39  ;;  %v412_v43 = vmul.f32 %v3342_v53, %v3342_v53  ;;  %v344_v46 = vpop.xlane.xlu1 %343 }
 0x39e   :  { %v411_v49 = vmul.f32 %v3345_v37, %v3345_v37  ;;  %v383_v51 = vmul.f32 0.125, %v344_v46 }
 0x39f   :  { %v3352_v55 = vsub.f32 %v3236_v32, %v381_v41  ;;  %v430_v57 = vsel %vm329_vm3, %v412_v43, 0.0 }
 0x3a0   :  { %431 = vadd.xlane.f32.xlu0 %v430_v57  ;;  %v341_v24 = vpop.xlane.xlu0 %340  ;;  %v427_v25 = vsel %vm329_vm3, %v411_v49, 0.0  ;;  %v3357_v60 = vsub.f32 %v3241_v34, %v383_v51 }
 0x3a1   :  { %v382_v62 = vmul.f32 0.125, %v341_v24  ;;  %428 = vadd.xlane.f32.xlu1 %v427_v25  ;;  %v350_v63 = vpop.xlane.xlu1 %349  ;;  %v413_v1 = vmul.f32 %v3352_v55, %v3352_v55 }
 0x3a2   :  { %v385_v2 = vmul.f32 0.125, %v350_v63  ;;  %v415_v32 = vmul.f32 %v3357_v60, %v3357_v60 }
 0x3a3   :  { %v3364_v3 = vsub.f32 %v3248_v36, %v382_v62  ;;  %v433_v4 = vsel %vm329_vm3, %v413_v1, 0.0 }
 0x3a4   :  { %v347_v5 = vpop.xlane.xlu0 %346  ;;  %v3368_v6 = vsub.f32 %v3255_v38, %v385_v2  ;;  %v439_v10 = vsel %vm329_vm3, %v415_v32, 0.0 }
 0x3a5   :  { %v384_v34 = vmul.f32 0.125, %v347_v5  ;;  %434 = vadd.xlane.f32.xlu1 %v433_v4  ;;  %v414_v7 = vmul.f32 %v3364_v3, %v3364_v3  ;;  %v356_v8 = vpop.xlane.xlu1 %355 }
 0x3a6   :  { %v387_v9 = vmul.f32 0.125, %v356_v8  ;;  %v417_v11 = vmul.f32 %v3368_v6, %v3368_v6 }
 0x3a7   :  { %v3376_v36 = vsub.f32 %v3262_v40, %v384_v34  ;;  %v436_v12 = vsel %vm329_vm3, %v414_v7, 0.0 }
 0x3a8   :  { %437 = vadd.xlane.f32.xlu0 %v436_v12  ;;  %v353_v38 = vpop.xlane.xlu0 %352  ;;  %v3380_v13 = vsub.f32 %v3269_v42, %v387_v9  ;;  %v445_v22 = vsel %vm329_vm3, %v417_v11, 0.0 }
 0x3a9   :  { %v386_v14 = vmul.f32 0.125, %v353_v38  ;;  %440 = vadd.xlane.f32.xlu1 %v439_v10  ;;  %v416_v16 = vmul.f32 %v3376_v36, %v3376_v36  ;;  %v362_v18 = vpop.xlane.xlu1 %361  ;;  %v28_v38 = vld [vmem:[%s4186_s4 + $0x20] sm:$0xf] }
 0x3aa   :  { %v389_v20 = vmul.f32 0.125, %v362_v18  ;;  %v419_v40 = vmul.f32 %v3380_v13, %v3380_v13  ;;  %2893 = vmatprep.subr.msk.bf16.mxu0 %vm615_vm4, %v28_v38 }
 0x3ab   :  { %v3388_v23 = vsub.f32 %v3276_v45, %v386_v14  ;;  %v442_v30 = vsel %vm329_vm3, %v416_v16, 0.0  ;;  %v3443_v14 = vpop.f32.mrf.mxu1  ;;  %v255_v16 = vsub.s32 6, %v3151_v27 }
 0x3ac   :  { %443 = vadd.xlane.f32.xlu0 %v442_v30  ;;  %v359_v42 = vpop.xlane.xlu0 %358  ;;  %v3392_v31 = vsub.f32 %v3283_v47, %v389_v20  ;;  %v451_v39 = vsel %vm329_vm3, %v419_v40, 0.0 }
 0x3ad   :  { %v388_v44 = vmul.f32 0.125, %v359_v42  ;;  %446 = vadd.xlane.f32.xlu1 %v445_v22  ;;  %v418_v58 = vmul.f32 %v3388_v23, %v3388_v23  ;;  %v368_v52 = vpop.xlane.xlu1 %367  ;;  %v832_v40 = vrot.slane %v3157_v29, %v255_v16 }
 0x3ae   :  { %v391_v35 = vmul.f32 0.125, %v368_v52  ;;  %v421_v45 = vmul.f32 %v3392_v31, %v3392_v31 }
 0x3af   :  { %v3400_v41 = vsub.f32 %v3290_v50, %v388_v44  ;;  %v448_v43 = vsel %vm329_vm3, %v418_v58, 0.0 }
 0x3b0   :  { %449 = vadd.xlane.f32.xlu0 %v448_v43  ;;  %v365_v47 = vpop.xlane.xlu0 %364  ;;  %v3404_v46 = vsub.f32 %v3297_v54, %v391_v35  ;;  %v457_v25 = vsel %vm329_vm3, %v421_v45, 0.0 }
 0x3b1   :  { %v390_v49 = vmul.f32 0.125, %v365_v47  ;;  %452 = vadd.xlane.f32.xlu1 %v451_v39  ;;  %v420_v51 = vmul.f32 %v3400_v41, %v3400_v41  ;;  %v374_v57 = vpop.xlane.xlu1 %373 }
 0x3b2   :  { %v393_v24 = vmul.f32 0.125, %v374_v57  ;;  %v423_v50 = vmul.f32 %v3404_v46, %v3404_v46 }
 0x3b3   :  { %v3412_v62 = vsub.f32 %v3304_v56, %v390_v49  ;;  %v454_v63 = vsel %vm329_vm3, %v420_v51, 0.0 }
 0x3b4   :  { %455 = vadd.xlane.f32.xlu0 %v454_v63  ;;  %v371_v54 = vpop.xlane.xlu0 %370  ;;  %v3416_v1 = vsub.f32 %v3311_v59, %v393_v24  ;;  %v463_v4 = vsel %vm329_vm3, %v423_v50, 0.0 }
 0x3b5   :  { %v392_v2 = vmul.f32 0.125, %v371_v54  ;;  %458 = vadd.xlane.f32.xlu1 %v457_v25  ;;  %v422_v32 = vmul.f32 %v3412_v62, %v3412_v62 }
 0x3b6   :  { %v425_v5 = vmul.f32 %v3416_v1, %v3416_v1 }
 0x3b7   :  { %v3424_v56 = vsub.f32 %v3318_v61, %v392_v2  ;;  %v460_v34 = vsel %vm329_vm3, %v422_v32, 0.0 }
 0x3b8   :  { %461 = vadd.xlane.f32.xlu0 %v460_v34  ;;  %v377_v7 = vpop.xlane.xlu0 %376  ;;  %v469_v9 = vsel %vm329_vm3, %v425_v5, 0.0 }
 0x3b9   :  { %v394_v8 = vmul.f32 0.125, %v377_v7  ;;  %464 = vadd.xlane.f32.xlu1 %v463_v4  ;;  %v424_v59 = vmul.f32 %v3424_v56, %v3424_v56  ;;  %v235_v7 = vsub.s32 4, %v3151_v27 }
 0x3bb   :  { %v3431_v10 = vsub.f32 %v3327_v0, %v394_v8  ;;  %v466_v11 = vsel %vm329_vm3, %v424_v59, 0.0  ;;  %v617_v0 = vsel %vm615_vm4, %v28_v38, 0 }
 0x3bc   :  { %467 = vadd.xlane.f32.xlu0 %v466_v11  ;;  %2744 = vmatpush3.bf16.msra.mxu0 %v617_v0 }
 0x3bd   :  { %470 = vadd.xlane.f32.xlu1 %v469_v9  ;;  %v426_v61 = vmul.f32 %v3431_v10, %v3431_v10  ;;  %2787 = vmatprep.subr.bf16.mxu0 %v3077_v15 }
 0x3bf   :  { %v472_v12 = vsel %vm329_vm3, %v426_v61, 0.0  ;;  %v3458_v61 = vrot.slane %v3157_v29, %v225_v48 }
 0x3c0   :  { %473 = vadd.xlane.f32.xlu0 %v472_v12 }
 0x429   :  { %v432_v18 = vpop.xlane.xlu0 %431  ;;  %v882_v20 = vpop.f32.mrf.mxu1 }
 0x42a   :  { %v476_v22 = vmul.f32 0.125, %v432_v18  ;;  %v429_v30 = vpop.xlane.xlu1 %428  ;;  %v883_v39 = vadd.f32 %v882_v20, %v832_v40 }
 0x42b   :  { %v475_v42 = vmul.f32 0.125, %v429_v30  ;;  %v2767_v44 = vpop.f32.mrf.mxu1 }
 0x42c   :  { %v492_v58 = vadd.f32 1e-05, %v476_v22  ;;  %v3453_v59 = vpack.c.bf16 %v883_v39, %v883_v39  ;;  %v3465_v22 = vrot.slane %v3157_v29, %v235_v7 }
 0x42d   :  { %v491_v52 = vadd.f32 1e-05, %v475_v42  ;;  %v885_v35 = vpop.f32.mrf.mxu1 }
 0x42e   :  { %2975 = vrsqrt.f32 %v492_v58  ;;  %v3449_v45 = vadd.f32 %v885_v35, %v832_v40  ;;  %v435_v43 = vpop.xlane.xlu1 %434 }
 0x42f   :  { %2977 = vrsqrt.f32 %v491_v52  ;;  %v477_v47 = vmul.f32 0.125, %v435_v43  ;;  %v2768_v49 = vpop.f32.mrf.mxu1 }
 0x430   :  { %v2918_v51 = vpack.i.bf16 %v3449_v45, %v883_v39 }
 0x431   :  { %v493_v57 = vadd.f32 1e-05, %v477_v47  ;;  %v438_v24 = vpop.xlane.xlu0 %437 }
 0x432   :  { %v478_v25 = vmul.f32 0.125, %v438_v24  ;;  %v441_v50 = vpop.xlane.xlu1 %440  ;;  %2919 = vrot.lane.b32.xlu0 %v2918_v51, %s3082_s24  ;;  %2914 = vrot.lane.b32.xlu1 %v2918_v51, %s3083_s25 }
 0x433   :  { %2979 = vrsqrt.f32 %v493_v57  ;;  %v479_v63 = vmul.f32 0.125, %v441_v50 }
 0x434   :  { %v494_v54 = vadd.f32 1e-05, %v478_v25 }
 0x435   :  { %v495_v2 = vadd.f32 1e-05, %v479_v63  ;;  %v444_v32 = vpop.xlane.xlu0 %443 }
 0x436   :  { %2981 = vrsqrt.f32 %v494_v54  ;;  %v480_v4 = vmul.f32 0.125, %v444_v32  ;;  %v447_v5 = vpop.xlane.xlu1 %446  ;;  %2924 = vrot.lane.b32.xlu1 %v2918_v51, %s3084_s26 }
 0x437   :  { %2983 = vrsqrt.f32 %v495_v2  ;;  %v481_v34 = vmul.f32 0.125, %v447_v5 }
 0x438   :  { %v496_v8 = vadd.f32 1e-05, %v480_v4 }
 0x439   :  { %v497_v9 = vadd.f32 1e-05, %v481_v34  ;;  %v450_v11 = vpop.xlane.xlu0 %449 }
 0x43a   :  { %2985 = vrsqrt.f32 %v496_v8  ;;  %v482_v12 = vmul.f32 0.125, %v450_v11  ;;  %v453_v38 = vpop.xlane.xlu1 %452  ;;  %918 = vrot.lane.b32.xlu1 %v3453_v59, %s3085_s27 }
 0x43b   :  { %v2976_v0 = vpop.eup %2975  ;;  %2987 = vrsqrt.f32 %v497_v9  ;;  %v483_v18 = vmul.f32 0.125, %v453_v38 }
 0x43c   :  { %v2978_v20 = vpop.eup %2977  ;;  %v498_v40 = vadd.f32 1e-05, %v482_v12  ;;  %v524_v48 = vmul.f32 %v2976_v0, %v3342_v53 }
 0x43d   :  { %v499_v30 = vadd.f32 1e-05, %v483_v18  ;;  %v456_v42 = vpop.xlane.xlu0 %455  ;;  %v523_v44 = vmul.f32 %v2978_v20, %v3345_v37 }
 0x43e   :  { %2989 = vrsqrt.f32 %v498_v40  ;;  %v484_v58 = vmul.f32 0.125, %v456_v42  ;;  %v459_v52 = vpop.xlane.xlu1 %458  ;;  %v544_v35 = vmul.f32 %v3458_v61, %v524_v48 }
 0x43f   :  { %2991 = vrsqrt.f32 %v499_v30  ;;  %v485_v39 = vmul.f32 0.125, %v459_v52  ;;  %v543_v43 = vmul.f32 %v3458_v61, %v523_v44 }
 0x440   :  { %v2980_v47 = vpop.eup %2979  ;;  %v500_v49 = vadd.f32 1e-05, %v484_v58  ;;  %v564_v51 = vadd.f32 %v3465_v22, %v544_v35 }
 0x441   :  { %v525_v57 = vmul.f32 %v2980_v47, %v3352_v55  ;;  %v501_v53 = vadd.f32 1e-05, %v485_v39  ;;  %v462_v24 = vpop.xlane.xlu0 %461  ;;  %v563_v25 = vadd.f32 %v3465_v22, %v543_v43 }
 0x442   :  { %2993 = vrsqrt.f32 %v500_v49  ;;  %v486_v37 = vmul.f32 0.125, %v462_v24  ;;  %v465_v50 = vpop.xlane.xlu1 %464 }
 0x443   :  { %v2982_v63 = vpop.eup %2981  ;;  %2995 = vrsqrt.f32 %v501_v53  ;;  %v487_v54 = vmul.f32 0.125, %v465_v50  ;;  %v579_v2 = vpack.c.bf16 %v564_v51, %v563_v25  ;;  %v545_v34 = vmul.f32 %v3458_v61, %v525_v57 }
 0x444   :  { %v2984_v32 = vpop.eup %2983  ;;  %v526_v4 = vmul.f32 %v2982_v63, %v3364_v3  ;;  %v502_v5 = vadd.f32 1e-05, %v486_v37 }
 0x445   :  { %v503_v8 = vadd.f32 1e-05, %v487_v54  ;;  %2745 = vmatprep.mubr.msk.bf16.mxu0 %vm329_vm3, %v579_v2  ;;  %v468_v55 = vpop.xlane.xlu0 %467  ;;  %v527_v9 = vmul.f32 %v2984_v32, %v3357_v60  ;;  %v565_v48 = vadd.f32 %v3465_v22, %v545_v34 }
 0x446   :  { %2997 = vrsqrt.f32 %v502_v5  ;;  %v488_v11 = vmul.f32 0.125, %v468_v55  ;;  %v471_v12 = vpop.xlane.xlu1 %470  ;;  %v546_v38 = vmul.f32 %v3458_v61, %v526_v4 }
 0x447   :  { %v2986_v0 = vpop.eup %2985  ;;  %2999 = vrsqrt.f32 %v503_v8  ;;  %v489_v18 = vmul.f32 0.125, %v471_v12  ;;  %v547_v20 = vmul.f32 %v3458_v61, %v527_v9 }
 0x448   :  { %v2988_v3 = vpop.eup %2987  ;;  %v504_v40 = vadd.f32 1e-05, %v488_v11  ;;  %v566_v30 = vadd.f32 %v3465_v22, %v546_v38  ;;  %v528_v42 = vmul.f32 %v2986_v0, %v3376_v36 }
 0x449   :  { %v505_v44 = vadd.f32 1e-05, %v489_v18  ;;  %v474_v60 = vpop.xlane.xlu0 %473  ;;  %v529_v58 = vmul.f32 %v2988_v3, %v3368_v6  ;;  %v567_v47 = vadd.f32 %v3465_v22, %v547_v20 }
 0x44a   :  { %3001 = vrsqrt.f32 %v504_v40  ;;  %v490_v52 = vmul.f32 0.125, %v474_v60  ;;  %v580_v35 = vpack.c.bf16 %v566_v30, %v565_v48  ;;  %v548_v39 = vmul.f32 %v3458_v61, %v528_v42 }
 0x44b   :  { %v2990_v43 = vpop.eup %2989  ;;  %3003 = vrsqrt.f32 %v505_v44  ;;  %v549_v53 = vmul.f32 %v3458_v61, %v529_v58 }
 0x44c   :  { %v2992_v49 = vpop.eup %2991  ;;  %v506_v51 = vadd.f32 1e-05, %v490_v52  ;;  %2746 = vmatmul.mubr.msk.bf16.vlgmr.msra.gmra.mxu0 %vm329_vm3, %v580_v35  ;;  %v568_v57 = vadd.f32 %v3465_v22, %v548_v39  ;;  %v530_v36 = vmul.f32 %v2990_v43, %v3388_v23 }
 0x44d   :  { %v531_v6 = vmul.f32 %v2992_v49, %v3380_v13  ;;  %v569_v63 = vadd.f32 %v3465_v22, %v549_v53 }
 0x44e   :  { %3005 = vrsqrt.f32 %v506_v51  ;;  %v581_v24 = vpack.c.bf16 %v568_v57, %v567_v47  ;;  %v550_v25 = vmul.f32 %v3458_v61, %v530_v36 }
 0x44f   :  { %v2994_v37 = vpop.eup %2993  ;;  %v551_v23 = vmul.f32 %v3458_v61, %v531_v6 }
 0x450   :  { %v2996_v50 = vpop.eup %2995  ;;  %2749 = vmatprep.mubr.msk.bf16.mxu0 %vm329_vm3, %v581_v24  ;;  %v570_v54 = vadd.f32 %v3465_v22, %v550_v25  ;;  %v532_v2 = vmul.f32 %v2994_v37, %v3400_v41 }
 0x451   :  { %v533_v32 = vmul.f32 %v2996_v50, %v3392_v31  ;;  %v571_v8 = vadd.f32 %v3465_v22, %v551_v23 }
 0x452   :  { %v582_v4 = vpack.c.bf16 %v570_v54, %v569_v63  ;;  %v552_v13 = vmul.f32 %v3458_v61, %v532_v2 }
 0x453   :  { %v2998_v5 = vpop.eup %2997  ;;  %v553_v11 = vmul.f32 %v3458_v61, %v533_v32 }
 0x454   :  { %v3000_v34 = vpop.eup %2999  ;;  %2750 = vmatmul.mubr.msk.bf16.gmra.mxu0 %vm329_vm3, %v582_v4  ;;  %v572_v55 = vadd.f32 %v3465_v22, %v552_v13  ;;  %v534_v9 = vmul.f32 %v2998_v5, %v3412_v62 }
 0x455   :  { %v535_v41 = vmul.f32 %v3000_v34, %v3404_v46  ;;  %v573_v18 = vadd.f32 %v3465_v22, %v553_v11 }
 0x456   :  { %v583_v12 = vpack.c.bf16 %v572_v55, %v571_v8  ;;  %v554_v31 = vmul.f32 %v3458_v61, %v534_v9 }
 0x457   :  { %v3002_v38 = vpop.eup %3001  ;;  %v555_v40 = vmul.f32 %v3458_v61, %v535_v41 }
 0x458   :  { %v3004_v0 = vpop.eup %3003  ;;  %2753 = vmatprep.mubr.msk.bf16.mxu0 %vm329_vm3, %v583_v12  ;;  %v574_v20 = vadd.f32 %v3465_v22, %v554_v31  ;;  %v536_v3 = vmul.f32 %v3002_v38, %v3424_v56  ;;  %v3589_v12 = vpack.c.bf16 %v3449_v45, %v3449_v45 }
 0x459   :  { %v537_v62 = vmul.f32 %v3004_v0, %v3416_v1  ;;  %v575_v42 = vadd.f32 %v3465_v22, %v555_v40 }
 0x45a   :  { %v584_v48 = vpack.c.bf16 %v574_v20, %v573_v18  ;;  %v556_v46 = vmul.f32 %v3458_v61, %v536_v3 }
 0x45b   :  { %v3006_v30 = vpop.eup %3005  ;;  %v557_v58 = vmul.f32 %v3458_v61, %v537_v62 }
 0x45c   :  { %2754 = vmatmul.mubr.msk.bf16.gmra.mxu0 %vm329_vm3, %v584_v48  ;;  %v576_v44 = vadd.f32 %v3465_v22, %v556_v46  ;;  %v538_v60 = vmul.f32 %v3006_v30, %v3431_v10 }
 0x45d   :  { %v577_v1 = vadd.f32 %v3465_v22, %v557_v58 }
 0x45e   :  { %v585_v52 = vpack.c.bf16 %v576_v44, %v575_v42  ;;  %v558_v56 = vmul.f32 %v3458_v61, %v538_v60  ;;  %v245_v61 = vsub.s32 5, %v3151_v27 }
 0x460   :  { %2757 = vmatprep.mubr.msk.bf16.mxu0 %vm329_vm3, %v585_v52  ;;  %v578_v35 = vadd.f32 %v3465_v22, %v558_v56  ;;  %v3537_v51 = vrot.slane %v3157_v29, %v245_v61 }
 0x462   :  { %v586_v39 = vpack.c.bf16 %v578_v35, %v577_v1 }
 0x464   :  { %2758 = vmatmul.mubr.msk.bf16.gmra.mxu0 %vm329_vm3, %v586_v39 }
 0x465   :  { %2789 = vmatprep.mubr.msk.bf16.mxu0 %vm3078_vm1, %v3077_v15 }
 0x4a4   :  { %v2915_v43 = vpop.permute.xlu1 %2914  ;;  %v2920_v31 = vpop.permute.xlu0 %2919 }
 0x4a5   :  { %v2916_v11 = vunpack.i.l.bf16 %v2915_v43  ;;  %v2921_v0 = vunpack.i.l.bf16 %v2920_v31  ;;  %v2917_v18 = vunpack.i.h.bf16 %v2915_v43  ;;  %v2922_v30 = vunpack.i.h.bf16 %v2920_v31 }
 0x4a7   :  { %v3598_v3 = vpack.c.bf16 %v2916_v11, %v2916_v11  ;;  %v3605_v62 = vpack.c.bf16 %v2917_v18, %v2917_v18  ;;  %v3607_v48 = vpack.c.bf16 %v2921_v0, %v2921_v0  ;;  %v3625_v58 = vpack.c.bf16 %v2922_v30, %v2922_v30 }
 0x4a8   :  { %v3525_v47 = vpop.permute.xlu1 %2924 }
 0x4a9   :  { %v2926_v45 = vunpack.i.l.bf16 %v3525_v47  ;;  %v2927_v52 = vunpack.i.h.bf16 %v3525_v47 }
 0x4ab   :  { %v3616_v44 = vpack.c.bf16 %v2926_v45, %v2926_v45  ;;  %v3642_v35 = vpack.c.bf16 %v2927_v52, %v2927_v52 }
 0x4ac   :  { %v919_v10 = vpop.permute.xlu1 %918 }
 0x4ad   :  { %v997_v49 = vsel %vm329_vm3, %v919_v10, 0 }
 0x4ae   :  { %2770 = vmatpush3.bf16.xpose.msra.mxu1 %v997_v49 }
 0x4af   :  { %2775 = vmatprep.subr.bf16.mxu1 %v3077_v15 }
 0x4b5   :  { %2772 = vmatmul.mubr.msk.bf16.vlgmr.msra.gmra.mxu1 %vm329_vm3, %v3453_v59 }
 0x4b6   :  { %2777 = vmatprep.mubr.msk.bf16.mxu1 %vm3078_vm1, %v3077_v15 }
 0x50c   :  { %v2747_v22 = vpop.f32.mrf.mxu0 }
 0x50d   :  { %v3555_v4 = vadd.f32 %v2747_v22, %v3537_v51 }
 0x50e   :  { %v653_v57 = vpop.f32.mrf.mxu0 }
 0x50f   :  { %v3540_v36 = vadd.f32 %v653_v57, %v3537_v51 }
 0x510   :  { %v2748_v53 = vpop.f32.mrf.mxu0 }
 0x511   :  { %732 = vrot.lane.b32.xlu0 %v3540_v36, %s3086_s28  ;;  %v3565_v5 = vadd.f32 %v2748_v53, %v3537_v51 }
 0x512   :  { %v656_v6 = vpop.f32.mrf.mxu0 }
 0x513   :  { %v3545_v24 = vadd.f32 %v656_v6, %v3537_v51 }
 0x514   :  { %v2751_v25 = vpop.f32.mrf.mxu0 }
 0x515   :  { %734 = vrot.lane.b32.xlu1 %v3545_v24, %s3086_s28  ;;  %v3623_v60 = vadd.f32 %v2751_v25, %v3537_v51 }
 0x516   :  { %v669_v37 = vpop.f32.mrf.mxu0 }
 0x517   :  { %v3575_v8 = vadd.f32 %v669_v37, %v3537_v51 }
 0x518   :  { %v2752_v29 = vpop.f32.mrf.mxu0 }
 0x519   :  { %v3633_v56 = vadd.f32 %v2752_v29, %v3537_v51 }
 0x51a   :  { %v672_v50 = vpop.f32.mrf.mxu0 }
 0x51b   :  { %v3585_v41 = vadd.f32 %v672_v50, %v3537_v51 }
 0x51c   :  { %v2755_v63 = vpop.f32.mrf.mxu0 }
 0x51d   :  { %v3568_v34 = vadd.f32 %v2755_v63, %v3537_v51 }
 0x51e   :  { %v685_v54 = vpop.f32.mrf.mxu0 }
 0x51f   :  { %v3550_v2 = vadd.f32 %v685_v54, %v3537_v51 }
 0x520   :  { %v2756_v23 = vpop.f32.mrf.mxu0 }
 0x521   :  { %748 = vrot.lane.b32.xlu0 %v3550_v2, %s3086_s28  ;;  %v3578_v55 = vadd.f32 %v2756_v23, %v3537_v51 }
 0x522   :  { %v688_v32 = vpop.f32.mrf.mxu0 }
 0x523   :  { %v3558_v13 = vadd.f32 %v688_v32, %v3537_v51 }
 0x524   :  { %v2759_v9 = vpop.f32.mrf.mxu0 }
 0x525   :  { %750 = vrot.lane.b32.xlu1 %v3558_v13, %s3086_s28  ;;  %736 = vrot.lane.b32.xlu0 %v3555_v4, %s3086_s28  ;;  %v3636_v1 = vadd.f32 %v2759_v9, %v3537_v51 }
 0x526   :  { %v701_v38 = vpop.f32.mrf.mxu0 }
 0x527   :  { %v3596_v20 = vadd.f32 %v701_v38, %v3537_v51 }
 0x528   :  { %v2760_v40 = vpop.f32.mrf.mxu0 }
 0x529   :  { %752 = vrot.lane.b32.xlu1 %v3568_v34, %s3086_s28  ;;  %738 = vrot.lane.b32.xlu0 %v3565_v5, %s3086_s28  ;;  %v3648_v39 = vadd.f32 %v2760_v40, %v3537_v51 }
 0x52a   :  { %v704_v46 = vpop.f32.mrf.mxu0 }
 0x52b   :  { %v3614_v42 = vadd.f32 %v704_v46, %v3537_v51 }
 0x52d   :  { %754 = vrot.lane.b32.xlu1 %v3578_v55, %s3086_s28  ;;  %740 = vrot.lane.b32.xlu0 %v3575_v8, %s3086_s28 }
 0x531   :  { %1040 = vrot.lane.b32.xlu1 %v3589_v12, %s3085_s27  ;;  %742 = vrot.lane.b32.xlu0 %v3585_v41, %s3086_s28 }
 0x535   :  { %756 = vrot.lane.b32.xlu1 %v3596_v20, %s3086_s28  ;;  %1153 = vrot.lane.b32.xlu0 %v3598_v3, %s3085_s27 }
 0x539   :  { %1266 = vrot.lane.b32.xlu1 %v3605_v62, %s3085_s27  ;;  %1379 = vrot.lane.b32.xlu0 %v3607_v48, %s3085_s27 }
 0x53d   :  { %758 = vrot.lane.b32.xlu1 %v3614_v42, %s3086_s28  ;;  %1605 = vrot.lane.b32.xlu0 %v3616_v44, %s3085_s27 }
 0x541   :  { %1492 = vrot.lane.b32.xlu1 %v3625_v58, %s3085_s27  ;;  %744 = vrot.lane.b32.xlu0 %v3623_v60, %s3086_s28 }
 0x545   :  { %760 = vrot.lane.b32.xlu1 %v3636_v1, %s3086_s28  ;;  %746 = vrot.lane.b32.xlu0 %v3633_v56, %s3086_s28 }
 0x549   :  { %1718 = vrot.lane.b32.xlu1 %v3642_v35, %s3085_s27  ;;  %764 = vrot.lane.b32.xlu0 %v3540_v36, %s3087_s29 }
 0x54d   :  { %762 = vrot.lane.b32.xlu1 %v3648_v39, %s3086_s28  ;;  %780 = vrot.lane.b32.xlu0 %v3550_v2, %s3087_s29 }
 0x551   :  { %766 = vrot.lane.b32.xlu1 %v3545_v24, %s3087_s29  ;;  %768 = vrot.lane.b32.xlu0 %v3555_v4, %s3087_s29 }
 0x555   :  { %782 = vrot.lane.b32.xlu1 %v3558_v13, %s3087_s29  ;;  %770 = vrot.lane.b32.xlu0 %v3565_v5, %s3087_s29 }
 0x559   :  { %784 = vrot.lane.b32.xlu1 %v3568_v34, %s3087_s29  ;;  %772 = vrot.lane.b32.xlu0 %v3575_v8, %s3087_s29 }
 0x55d   :  { %786 = vrot.lane.b32.xlu1 %v3578_v55, %s3087_s29  ;;  %774 = vrot.lane.b32.xlu0 %v3585_v41, %s3087_s29 }
 0x561   :  { %788 = vrot.lane.b32.xlu1 %v3596_v20, %s3087_s29  ;;  %776 = vrot.lane.b32.xlu0 %v3623_v60, %s3087_s29 }
 0x565   :  { %790 = vrot.lane.b32.xlu1 %v3614_v42, %s3087_s29  ;;  %778 = vrot.lane.b32.xlu0 %v3633_v56, %s3087_s29 }
 0x569   :  { %792 = vrot.lane.b32.xlu1 %v3636_v1, %s3087_s29  ;;  %796 = vrot.lane.b32.xlu0 %v3540_v36, %s3088_s30 }
 0x56d   :  { %794 = vrot.lane.b32.xlu1 %v3648_v39, %s3087_s29  ;;  %812 = vrot.lane.b32.xlu0 %v3550_v2, %s3088_s30 }
 0x571   :  { %798 = vrot.lane.b32.xlu1 %v3545_v24, %s3088_s30  ;;  %800 = vrot.lane.b32.xlu0 %v3555_v4, %s3088_s30 }
 0x575   :  { %v3671_v43 = vpop.f32.mrf.mxu1  ;;  %814 = vrot.lane.b32.xlu1 %v3558_v13, %s3088_s30  ;;  %802 = vrot.lane.b32.xlu0 %v3565_v5, %s3088_s30 }
 0x577   :  { %v2773_v47 = vpop.f32.mrf.mxu1 }
 0x579   :  { %v1036_v10 = vpop.f32.mrf.mxu1  ;;  %816 = vrot.lane.b32.xlu1 %v3568_v34, %s3088_s30  ;;  %804 = vrot.lane.b32.xlu0 %v3575_v8, %s3088_s30 }
 0x57b   :  { %v2774_v49 = vpop.f32.mrf.mxu1 }
 0x57d   :  { %818 = vrot.lane.b32.xlu1 %v3578_v55, %s3088_s30  ;;  %806 = vrot.lane.b32.xlu0 %v3585_v41, %s3088_s30 }
 0x581   :  { %820 = vrot.lane.b32.xlu1 %v3596_v20, %s3088_s30  ;;  %808 = vrot.lane.b32.xlu0 %v3623_v60, %s3088_s30 }
 0x583   :  { %v733_v22 = vpop.permute.xlu0 %732 }
 0x585   :  { %822 = vrot.lane.b32.xlu1 %v3614_v42, %s3088_s30  ;;  %810 = vrot.lane.b32.xlu0 %v3633_v56, %s3088_s30 }
 0x587   :  { %v735_v51 = vpop.permute.xlu1 %734 }
 0x589   :  { %824 = vrot.lane.b32.xlu1 %v3636_v1, %s3088_s30  ;;  %921 = vperm.xlu0 %2928, %v3540_v36  }
 0x58d   :  { %826 = vrot.lane.b32.xlu1 %v3648_v39, %s3088_s30  ;;  %1046 = vperm.xlu0 %2928, %v3558_v13  }
 0x591   :  { %924 = vperm.xlu1 %2929, %v3545_v24   ;;  %1049 = vperm.xlu0 %2928, %v3568_v34  }
 0x593   :  { %v749_v57 = vpop.permute.xlu0 %748 }
 0x595   :  { %1043 = vperm.xlu1 %2929, %v3550_v2   ;;  %1052 = vperm.xlu0 %2928, %v3578_v55  }
 0x597   :  { %v751_v53 = vpop.permute.xlu1 %750  ;;  %v737_v6 = vpop.permute.xlu0 %736 }
 0x599   :  { %927 = vperm.xlu1 %2929, %v3555_v4   ;;  %1055 = vperm.xlu0 %2928, %v3596_v20  }
 0x59b   :  { %v753_v36 = vpop.permute.xlu1 %752  ;;  %v739_v25 = vpop.permute.xlu0 %738 }
 0x59d   :  { %930 = vperm.xlu1 %2929, %v3565_v5   ;;  %1058 = vperm.xlu0 %2928, %v3614_v42  }
 0x59f   :  { %v755_v24 = vpop.permute.xlu1 %754  ;;  %v3695_v37 = vpop.permute.xlu0 %740 }
 0x5a1   :  { %933 = vperm.xlu1 %2929, %v3575_v8   ;;  %1061 = vperm.xlu0 %2928, %v3636_v1  }
 0x5a3   :  { %v1041_v29 = vpop.permute.xlu1 %1040  ;;  %v3699_v50 = vpop.permute.xlu0 %742 }
 0x5a4   :  { %v1110_v63 = vsel %vm329_vm3, %v1041_v29, 0 }
 0x5a5   :  { %936 = vperm.xlu1 %2929, %v3585_v41   ;;  %2776 = vmatpush3.bf16.xpose.msra.mxu1 %v1110_v63 }
 0x5a6   :  { %1064 = vperm.xlu0 %2928, %v3648_v39   ;;  %2781 = vmatprep.subr.bf16.mxu1 %v3077_v15 }
 0x5a7   :  { %v757_v54 = vpop.permute.xlu1 %756  ;;  %v1154_v2 = vpop.permute.xlu0 %1153 }
 0x5a8   :  { %v1223_v13 = vsel %vm329_vm3, %v1154_v2, 0 }
 0x5a9   :  { %939 = vperm.xlu1 %2929, %v3623_v60  }
 0x5aa   :  { %1159 = vperm.xlu0 %2928, %v735_v51  }
 0x5ab   :  { %v1267_v23 = vpop.permute.xlu1 %1266  ;;  %v1380_v32 = vpop.permute.xlu0 %1379 }
 0x5ac   :  { %v1336_v4 = vsel %vm329_vm3, %v1267_v23, 0  ;;  %2778 = vmatmul.mubr.msk.bf16.vlgmr.msra.gmra.mxu1 %vm329_vm3, %v3589_v12  ;;  %v1449_v11 = vsel %vm329_vm3, %v1380_v32, 0 }
 0x5ad   :  { %942 = vperm.xlu1 %2929, %v3633_v56   ;;  %2788 = vmatpush3.bf16.xpose.msra.mxu0 %v1336_v4 }
 0x5ae   :  { %1272 = vperm.xlu0 %2928, %v751_v53   ;;  %2782 = vmatpush3.bf16.xpose.msra.mxu1 %v1223_v13 }
 0x5af   :  { %v759_v5 = vpop.permute.xlu1 %758  ;;  %v1606_v34 = vpop.permute.xlu0 %1605  ;;  %2783 = vmatprep.mubr.msk.bf16.mxu1 %vm3078_vm1, %v3077_v15  ;;  %2793 = vmatprep.subr.bf16.mxu1 %v3077_v15 }
 0x5b0   :  { %2799 = vmatprep.subr.bf16.mxu0 %v3077_v15  ;;  %v1675_v20 = vsel %vm329_vm3, %v1606_v34, 0 }
 0x5b1   :  { %1156 = vperm.xlu1 %2929, %v733_v22  }
 0x5b2   :  { %1275 = vperm.xlu0 %2928, %v753_v36  }
 0x5b3   :  { %v1493_v8 = vpop.permute.xlu1 %1492  ;;  %v745_v55 = vpop.permute.xlu0 %744 }
 0x5b4   :  { %v1562_v9 = vsel %vm329_vm3, %v1493_v8, 0  ;;  %2790 = vmatmul.mubr.msk.bf16.vlgmr.msra.gmra.mxu0 %vm329_vm3, %v3605_v62 }
 0x5b5   :  { %2784 = vmatmul.mubr.msk.bf16.vlgmr.msra.gmra.mxu1 %vm329_vm3, %v3598_v3  ;;  %2800 = vmatpush3.bf16.xpose.msra.mxu0 %v1562_v9 }
 0x5b6   :  { %1278 = vperm.xlu0 %2928, %v755_v24   ;;  %1269 = vperm.xlu1 %2929, %v749_v57  }
 0x5b7   :  { %2794 = vmatpush3.bf16.xpose.msra.mxu1 %v1449_v11  ;;  %v761_v41 = vpop.permute.xlu1 %760  ;;  %v747_v31 = vpop.permute.xlu0 %746  ;;  %2801 = vmatprep.mubr.msk.bf16.mxu0 %vm3078_vm1, %v3077_v15 }
 0x5b8   :  { %2795 = vmatprep.mubr.msk.bf16.mxu1 %vm3078_vm1, %v3077_v15  ;;  %2805 = vmatprep.subr.bf16.mxu1 %v3077_v15 }
 0x5b9   :  { %2811 = vmatprep.subr.bf16.mxu0 %v3077_v15 }
 0x5ba   :  { %1281 = vperm.xlu0 %2928, %v757_v54   ;;  %1162 = vperm.xlu1 %2929, %v737_v6  }
 0x5bb   :  { %v1719_v38 = vpop.permute.xlu1 %1718  ;;  %v765_v0 = vpop.permute.xlu0 %764 }
 0x5bc   :  { %v1788_v18 = vsel %vm329_vm3, %v1719_v38, 0  ;;  %2802 = vmatmul.mubr.msk.bf16.vlgmr.msra.gmra.mxu0 %vm329_vm3, %v3625_v58 }
 0x5bd   :  { %2812 = vmatpush3.bf16.xpose.msra.mxu0 %v1788_v18  ;;  %2813 = vmatprep.mubr.msk.bf16.mxu0 %vm3078_vm1, %v3077_v15 }
 0x5be   :  { %2796 = vmatmul.mubr.msk.bf16.vlgmr.msra.gmra.mxu1 %vm329_vm3, %v3607_v48  ;;  %1284 = vperm.xlu0 %2928, %v759_v5  }
 0x5bf   :  { %1165 = vperm.xlu1 %2929, %v739_v25   ;;  %2806 = vmatpush3.bf16.xpose.msra.mxu1 %v1675_v20  ;;  %v763_v40 = vpop.permute.xlu1 %762  ;;  %v781_v45 = vpop.permute.xlu0 %780 }
 0x5c0   :  { %2807 = vmatprep.mubr.msk.bf16.mxu1 %vm3078_vm1, %v3077_v15  ;;  %2817 = vmatprep.subr.bf16.mxu1 %v3077_v15 }
 0x5c1   :  { %2823 = vmatprep.subr.bf16.mxu0 %v3077_v15 }
 0x5c2   :  { %1287 = vperm.xlu0 %2928, %v761_v41  }
 0x5c3   :  { %1168 = vperm.xlu1 %2929, %v3695_v37   ;;  %v767_v46 = vpop.permute.xlu1 %766  ;;  %v769_v30 = vpop.permute.xlu0 %768 }
 0x5c4   :  { %2814 = vmatmul.mubr.msk.bf16.vlgmr.msra.gmra.mxu0 %vm329_vm3, %v3642_v35 }
 0x5c5   :  { %2825 = vmatprep.mubr.msk.bf16.mxu0 %vm3078_vm1, %v3077_v15 }
 0x5c6   :  { %2808 = vmatmul.mubr.msk.bf16.vlgmr.msra.gmra.mxu1 %vm329_vm3, %v3616_v44  ;;  %1290 = vperm.xlu0 %2928, %v763_v40  }
 0x5c7   :  { %1171 = vperm.xlu1 %2929, %v3699_v50   ;;  %v783_v42 = vpop.permute.xlu1 %782  ;;  %v771_v60 = vpop.permute.xlu0 %770  ;;  %2819 = vmatprep.mubr.msk.bf16.mxu1 %vm3078_vm1, %v3077_v15 }
 0x5ca   :  { %1385 = vperm.xlu0 %2928, %v767_v46  }
 0x5cb   :  { %1174 = vperm.xlu1 %2929, %v745_v55   ;;  %v785_v52 = vpop.permute.xlu1 %784  ;;  %v773_v56 = vpop.permute.xlu0 %772  ;;  %v945_v55 = vand.u32 127, %v79_v26 }
 0x5cd   :  { %v3751_v41 = vsub.s32 %v945_v55, %v3151_v27 }
 0x5ce   :  { %1498 = vperm.xlu0 %2928, %v783_v42  }
 0x5cf   :  { %1177 = vperm.xlu1 %2929, %v747_v31   ;;  %v787_v1 = vpop.permute.xlu1 %786  ;;  %v775_v39 = vpop.permute.xlu0 %774 }
 0x5d2   :  { %1501 = vperm.xlu0 %2928, %v785_v52  }
 0x5d3   :  { %1382 = vperm.xlu1 %2929, %v765_v0   ;;  %v789_v47 = vpop.permute.xlu1 %788  ;;  %v777_v10 = vpop.permute.xlu0 %776 }
 0x5d6   :  { %1504 = vperm.xlu0 %2928, %v787_v1  }
 0x5d7   :  { %1495 = vperm.xlu1 %2929, %v781_v45   ;;  %v791_v49 = vpop.permute.xlu1 %790  ;;  %v779_v22 = vpop.permute.xlu0 %778 }
 0x5da   :  { %1507 = vperm.xlu0 %2928, %v789_v47  }
 0x5db   :  { %1388 = vperm.xlu1 %2929, %v769_v30   ;;  %v793_v51 = vpop.permute.xlu1 %792  ;;  %v797_v57 = vpop.permute.xlu0 %796 }
 0x5de   :  { %1510 = vperm.xlu0 %2928, %v791_v49  }
 0x5df   :  { %1391 = vperm.xlu1 %2929, %v771_v60   ;;  %v795_v53 = vpop.permute.xlu1 %794  ;;  %v813_v6 = vpop.permute.xlu0 %812 }
 0x5e2   :  { %1513 = vperm.xlu0 %2928, %v793_v51  }
 0x5e3   :  { %1394 = vperm.xlu1 %2929, %v773_v56   ;;  %v799_v36 = vpop.permute.xlu1 %798  ;;  %v801_v25 = vpop.permute.xlu0 %800 }
 0x5e6   :  { %1516 = vperm.xlu0 %2928, %v795_v53  }
 0x5e7   :  { %1397 = vperm.xlu1 %2929, %v775_v39   ;;  %v815_v24 = vpop.permute.xlu1 %814  ;;  %v803_v37 = vpop.permute.xlu0 %802 }
 0x5ea   :  { %1611 = vperm.xlu0 %2928, %v799_v36  }
 0x5eb   :  { %1400 = vperm.xlu1 %2929, %v777_v10   ;;  %v817_v29 = vpop.permute.xlu1 %816  ;;  %v805_v50 = vpop.permute.xlu0 %804 }
 0x5ee   :  { %1724 = vperm.xlu0 %2928, %v815_v24  }
 0x5ef   :  { %1403 = vperm.xlu1 %2929, %v779_v22   ;;  %v819_v63 = vpop.permute.xlu1 %818  ;;  %v807_v2 = vpop.permute.xlu0 %806 }
 0x5f2   :  { %1727 = vperm.xlu0 %2928, %v817_v29  }
 0x5f3   :  { %1608 = vperm.xlu1 %2929, %v797_v57   ;;  %v821_v54 = vpop.permute.xlu1 %820  ;;  %v809_v32 = vpop.permute.xlu0 %808 }
 0x5f6   :  { %1730 = vperm.xlu0 %2928, %v819_v63  }
 0x5f7   :  { %1721 = vperm.xlu1 %2929, %v813_v6   ;;  %v823_v23 = vpop.permute.xlu1 %822  ;;  %v811_v13 = vpop.permute.xlu0 %810 }
 0x5fa   :  { %1733 = vperm.xlu0 %2928, %v821_v54  }
 0x5fb   :  { %1614 = vperm.xlu1 %2929, %v801_v25   ;;  %v825_v4 = vpop.permute.xlu1 %824 }
 0x5fe   :  { %1736 = vperm.xlu0 %2928, %v823_v23  }
 0x5ff   :  { %1617 = vperm.xlu1 %2929, %v803_v37   ;;  %v827_v34 = vpop.permute.xlu1 %826 }
 0x602   :  { %1739 = vperm.xlu0 %2928, %v825_v4  }
 0x603   :  { %1620 = vperm.xlu1 %2929, %v805_v50  }
 0x604   :  { %v922_v5 = vpop.permute.xlu0 %921 }
 0x605   :  { %v949_v29 = vrot.slane %v922_v5, %v3751_v41 }
 0x606   :  { %1742 = vperm.xlu0 %2928, %v827_v34  }
 0x607   :  { %1623 = vperm.xlu1 %2929, %v807_v2  }
 0x608   :  { %v1047_v8 = vpop.permute.xlu0 %1046 }
 0x609   :  { %v1073_v0 = vrot.slane %v1047_v8, %v3751_v41 }
 0x60b   :  { %1626 = vperm.xlu1 %2929, %v809_v32  }
 0x60c   :  { %v925_v9 = vpop.permute.xlu1 %924  ;;  %v1050_v11 = vpop.permute.xlu0 %1049 }
 0x60d   :  { %v1077_v20 = vrot.slane %v1050_v11, %v3751_v41  ;;  %v953_v25 = vrot.slane %v925_v9, %v3751_v41 }
 0x60f   :  { %1629 = vperm.xlu1 %2929, %v811_v13   ;;  %v979_v2 = vsel %vm978_vm6, %v953_v25, %v949_v29 }
 0x610   :  { %v1044_v31 = vpop.permute.xlu1 %1043  ;;  %v1053_v38 = vpop.permute.xlu0 %1052 }
 0x611   :  { %v1069_v18 = vrot.slane %v1044_v31, %v3751_v41  ;;  %v1081_v40 = vrot.slane %v1053_v38, %v3751_v41 }
 0x613   :  { %v1098_v26 = vsel %vm978_vm6, %v1073_v0, %v1069_v18  ;;  %1926 = vrot.lane.b32.xlu1 %v3453_v59, %s3089_s6 }
 0x614   :  { %v1099_v45 = vsel %vm980_vm5, %v1077_v20, %v1098_v26  ;;  %v928_v46 = vpop.permute.xlu1 %927  ;;  %v1056_v30 = vpop.permute.xlu0 %1055 }
 0x615   :  { %v1100_v42 = vsel %vm982_vm7, %v1081_v40, %v1099_v45  ;;  %v1085_v60 = vrot.slane %v1056_v30, %v3751_v41  ;;  %v957_v37 = vrot.slane %v928_v46, %v3751_v41 }
 0x617   :  { %v1101_v52 = vsel %vm984_vm8, %v1085_v60, %v1100_v42  ;;  %v981_v4 = vsel %vm980_vm5, %v957_v37, %v979_v2 }
 0x618   :  { %v931_v56 = vpop.permute.xlu1 %930  ;;  %v1059_v1 = vpop.permute.xlu0 %1058 }
 0x619   :  { %v1089_v39 = vrot.slane %v1059_v1, %v3751_v41  ;;  %v961_v50 = vrot.slane %v931_v56, %v3751_v41 }
 0x61b   :  { %v1102_v47 = vsel %vm986_vm9, %v1089_v39, %v1101_v52  ;;  %v983_v34 = vsel %vm982_vm7, %v961_v50, %v981_v4 }
 0x61c   :  { %v934_v10 = vpop.permute.xlu1 %933  ;;  %v1062_v59 = vpop.permute.xlu0 %1061 }
 0x61d   :  { %v1093_v49 = vrot.slane %v1062_v59, %v3751_v41  ;;  %v965_v63 = vrot.slane %v934_v10, %v3751_v41 }
 0x61f   :  { %v1103_v22 = vsel %vm988_vm10, %v1093_v49, %v1102_v47  ;;  %v985_v5 = vsel %vm984_vm8, %v965_v63, %v983_v34 }
 0x620   :  { %v937_v51 = vpop.permute.xlu1 %936 }
 0x621   :  { %v1065_v57 = vpop.permute.xlu0 %1064  ;;  %v969_v23 = vrot.slane %v937_v51, %v3751_v41 }
 0x622   :  { %v1097_v53 = vrot.slane %v1065_v57, %v3751_v41 }
 0x623   :  { %v987_v9 = vsel %vm986_vm9, %v969_v23, %v985_v5 }
 0x624   :  { %v940_v6 = vpop.permute.xlu1 %939  ;;  %v3770_v36 = vsel %vm990_vm11, %v1097_v53, %v1103_v22 }
 0x625   :  { %v3773_v24 = vpop.permute.xlu0 %1159  ;;  %v973_v13 = vrot.slane %v940_v6, %v3751_v41 }
 0x627   :  { %v989_v31 = vsel %vm988_vm10, %v973_v13, %v987_v9 }
 0x628   :  { %v943_v54 = vpop.permute.xlu1 %942 }
 0x629   :  { %v1273_v32 = vpop.permute.xlu0 %1272  ;;  %v977_v8 = vrot.slane %v943_v54, %v3751_v41 }
 0x62a   :  { %v1299_v20 = vrot.slane %v1273_v32, %v3751_v41 }
 0x62b   :  { %v991_v38 = vsel %vm990_vm11, %v977_v8, %v989_v31 }
 0x62c   :  { %v1157_v55 = vpop.permute.xlu1 %1156  ;;  %v3792_v40 = vadd.f32 %v3671_v43, %v991_v38  ;;  %v1186_v38 = vrot.slane %v3773_v24, %v3751_v41 }
 0x62d   :  { %v1276_v11 = vpop.permute.xlu0 %1275  ;;  %v1182_v9 = vrot.slane %v1157_v55, %v3751_v41 }
 0x62e   :  { %v1303_v45 = vrot.slane %v1276_v11, %v3751_v41  ;;  %v1830_v1 = vsel %vm329_vm3, %v3792_v40, -inf }
 0x631   :  { %v1270_v0 = vpop.permute.xlu1 %1269  ;;  %v1279_v18 = vpop.permute.xlu0 %1278 }
 0x632   :  { %v1295_v26 = vrot.slane %v1270_v0, %v3751_v41  ;;  %v1307_v30 = vrot.slane %v1279_v18, %v3751_v41 }
 0x634   :  { %v1324_v46 = vsel %vm978_vm6, %v1299_v20, %v1295_v26 }
 0x635   :  { %v1325_v42 = vsel %vm980_vm5, %v1303_v45, %v1324_v46  ;;  %v1163_v60 = vpop.permute.xlu1 %1162  ;;  %v1282_v52 = vpop.permute.xlu0 %1281 }
 0x636   :  { %v1326_v56 = vsel %vm982_vm7, %v1307_v30, %v1325_v42  ;;  %v1190_v0 = vrot.slane %v1163_v60, %v3751_v41  ;;  %v1311_v20 = vrot.slane %v1282_v52, %v3751_v41  ;;  %v1211_v30 = vsel %vm978_vm6, %v1186_v38, %v1182_v9 }
 0x637   :  { %1831 = vmax.xlane.f32.xlu1 %v1830_v1 }
 0x639   :  { %v1285_v39 = vpop.permute.xlu0 %1284 }
 0x63a   :  { %v1166_v47 = vpop.permute.xlu1 %1165  ;;  %v1315_v42 = vrot.slane %v1285_v39, %v3751_v41 }
 0x63b   :  { %v1194_v26 = vrot.slane %v1166_v47, %v3751_v41 }
 0x63d   :  { %v3801_v43 = vpop.permute.xlu0 %1287 }
 0x63e   :  { %v1169_v10 = vpop.permute.xlu1 %1168  ;;  %v1319_v52 = vrot.slane %v3801_v43, %v3751_v41  ;;  %v1327_v43 = vsel %vm984_vm8, %v1311_v20, %v1326_v56 }
 0x63f   :  { %v1198_v24 = vrot.slane %v1169_v10, %v3751_v41 }
 0x641   :  { %v3803_v59 = vpop.permute.xlu0 %1290 }
 0x642   :  { %v1172_v49 = vpop.permute.xlu1 %1171  ;;  %v1323_v39 = vrot.slane %v3803_v59, %v3751_v41 }
 0x643   :  { %v1202_v47 = vrot.slane %v1172_v49, %v3751_v41 }
 0x645   :  { %v3805_v22 = vpop.permute.xlu0 %1385 }
 0x646   :  { %v1175_v51 = vpop.permute.xlu1 %1174 }
 0x647   :  { %v1206_v10 = vrot.slane %v1175_v51, %v3751_v41 }
 0x649   :  { %v1499_v57 = vpop.permute.xlu0 %1498 }
 0x64a   :  { %v3807_v53 = vpop.permute.xlu1 %1177  ;;  %v1525_v45 = vrot.slane %v1499_v57, %v3751_v41 }
 0x64d   :  { %v1502_v6 = vpop.permute.xlu0 %1501 }
 0x64e   :  { %v3809_v25 = vpop.permute.xlu1 %1382  ;;  %v1529_v9 = vrot.slane %v1502_v6, %v3751_v41 }
 0x64f   :  { %v1408_v56 = vrot.slane %v3809_v25, %v3751_v41 }
 0x651   :  { %v1505_v37 = vpop.permute.xlu0 %1504 }
 0x652   :  { %v1496_v29 = vpop.permute.xlu1 %1495  ;;  %v1533_v20 = vrot.slane %v1505_v37, %v3751_v41 }
 0x653   :  { %v1521_v31 = vrot.slane %v1496_v29, %v3751_v41  ;;  %v1212_v29 = vsel %vm980_vm5, %v1190_v0, %v1211_v30  ;;  %v1328_v0 = vsel %vm986_vm9, %v1315_v42, %v1327_v43 }
 0x654   :  { %v1213_v49 = vsel %vm982_vm7, %v1194_v26, %v1212_v29  ;;  %v1329_v26 = vsel %vm988_vm10, %v1319_v52, %v1328_v0 }
 0x655   :  { %v3811_v50 = vpop.permute.xlu0 %1507  ;;  %v1550_v57 = vsel %vm978_vm6, %v1525_v45, %v1521_v31  ;;  %v1210_v31 = vrot.slane %v3807_v53, %v3751_v41  ;;  %v1214_v45 = vsel %vm984_vm8, %v1198_v24, %v1213_v49  ;;  %v1412_v53 = vrot.slane %v3805_v22, %v3751_v41 }
 0x656   :  { %v3813_v63 = vpop.permute.xlu1 %1388  ;;  %v1551_v59 = vsel %vm980_vm5, %v1529_v9, %v1550_v57  ;;  %v1215_v6 = vsel %vm986_vm9, %v1202_v47, %v1214_v45  ;;  %v1537_v25 = vrot.slane %v3811_v50, %v3751_v41 }
 0x657   :  { %v1216_v24 = vsel %vm988_vm10, %v1206_v10, %v1215_v6  ;;  %v1416_v47 = vrot.slane %v3813_v63, %v3751_v41  ;;  %v1437_v50 = vsel %vm978_vm6, %v1412_v53, %v1408_v56 }
 0x658   :  { %v1217_v37 = vsel %vm990_vm11, %v1210_v31, %v1216_v24 }
 0x659   :  { %v3815_v54 = vpop.permute.xlu0 %1510 }
 0x65a   :  { %v3817_v2 = vpop.permute.xlu1 %1391  ;;  %v1541_v10 = vrot.slane %v3815_v54, %v3751_v41 }
 0x65b   :  { %v1420_v22 = vrot.slane %v3817_v2, %v3751_v41 }
 0x65d   :  { %v3819_v23 = vpop.permute.xlu0 %1513 }
 0x65e   :  { %v3821_v32 = vpop.permute.xlu1 %1394  ;;  %v1545_v49 = vrot.slane %v3819_v23, %v3751_v41 }
 0x65f   :  { %v1424_v43 = vrot.slane %v3821_v32, %v3751_v41  ;;  %v1438_v32 = vsel %vm980_vm5, %v1416_v47, %v1437_v50 }
 0x660   :  { %v1439_v6 = vsel %vm982_vm7, %v1420_v22, %v1438_v32 }
 0x661   :  { %v3823_v4 = vpop.permute.xlu0 %1516 }
 0x662   :  { %v3825_v13 = vpop.permute.xlu1 %1397  ;;  %v1549_v2 = vrot.slane %v3823_v4, %v3751_v41 }
 0x665   :  { %v3827_v34 = vpop.permute.xlu0 %1611 }
 0x666   :  { %v3829_v8 = vpop.permute.xlu1 %1400 }
 0x667   :  { %v1432_v23 = vrot.slane %v3829_v8, %v3751_v41 }
 0x669   :  { %v3831_v5 = vpop.permute.xlu0 %1724 }
 0x66a   :  { %v3834_v11 = vpop.permute.xlu1 %1403 }
 0x66c   :  { %v1146_v18 = vpop.f32.mrf.mxu1 }
 0x66d   :  { %v3844_v46 = vadd.f32 %v1146_v18, %v3770_v36  ;;  %v3846_v55 = vpop.permute.xlu0 %1727 }
 0x66e   :  { %v3851_v1 = vpop.permute.xlu1 %1608  ;;  %v2779_v60 = vpop.f32.mrf.mxu1  ;;  %v1755_v4 = vrot.slane %v3846_v55, %v3751_v41 }
 0x66f   :  { %v1833_v36 = vsel %vm329_vm3, %v3844_v46, -inf  ;;  %v1330_v60 = vsel %vm990_vm11, %v1323_v39, %v1329_v26  ;;  %v1751_v39 = vrot.slane %v3831_v5, %v3751_v41  ;;  %v1428_v5 = vrot.slane %v3825_v13, %v3751_v41 }
 0x670   :  { %v1149_v38 = vpop.f32.mrf.mxu1  ;;  %1834 = vmax.xlane.f32.xlu0 %v1833_v36  ;;  %v1552_v36 = vsel %vm982_vm7, %v1533_v20, %v1551_v59  ;;  %v1436_v20 = vrot.slane %v3834_v11, %v3751_v41 }
 0x671   :  { %v3868_v18 = vpop.permute.xlu0 %1730 }
 0x672   :  { %v1722_v51 = vpop.permute.xlu1 %1721  ;;  %v2780_v30 = vpop.f32.mrf.mxu1 }
 0x673   :  { %v1747_v42 = vrot.slane %v1722_v51, %v3751_v41  ;;  %v1553_v51 = vsel %vm984_vm8, %v1537_v25, %v1552_v36 }
 0x674   :  { %v1372_v57 = vpop.f32.mrf.mxu0  ;;  %v1554_v56 = vsel %vm986_vm9, %v1541_v10, %v1553_v51 }
 0x675   :  { %v1259_v52 = vpop.f32.mrf.mxu1  ;;  %v1734_v29 = vpop.permute.xlu0 %1733  ;;  %v1776_v31 = vsel %vm978_vm6, %v1751_v39, %v1747_v42  ;;  %v3909_v0 = vadd.f32 %v1372_v57, %v1330_v60  ;;  %v1440_v42 = vsel %vm984_vm8, %v1424_v43, %v1439_v6  ;;  %v1555_v60 = vsel %vm988_vm10, %v1545_v49, %v1554_v56 }
 0x676   :  { %v3895_v9 = vadd.f32 %v1259_v52, %v1217_v37  ;;  %v3897_v38 = vpop.permute.xlu1 %1614  ;;  %v2791_v63 = vpop.f32.mrf.mxu0  ;;  %v1777_v24 = vsel %vm980_vm5, %v1755_v4, %v1776_v31  ;;  %v1441_v55 = vsel %vm986_vm9, %v1428_v5, %v1440_v42  ;;  %v1759_v57 = vrot.slane %v3868_v18, %v3751_v41 }
 0x677   :  { %v2785_v54 = vpop.f32.mrf.mxu1  ;;  %v1556_v36 = vsel %vm990_vm11, %v1549_v2, %v1555_v60  ;;  %v1839_v11 = vsel %vm329_vm3, %v3909_v0, -inf  ;;  %v1763_v25 = vrot.slane %v1734_v29, %v3751_v41  ;;  %v1442_v37 = vsel %vm988_vm10, %v1432_v23, %v1441_v55 }
 0x678   :  { %v1375_v45 = vpop.f32.mrf.mxu0  ;;  %v1836_v59 = vsel %vm329_vm3, %v3895_v9, -inf  ;;  %v1778_v10 = vsel %vm982_vm7, %v1759_v57, %v1777_v24  ;;  %v1443_v18 = vsel %vm990_vm11, %v1436_v20, %v1442_v37  ;;  %v1642_v56 = vrot.slane %v3897_v38, %v3751_v41 }
 0x679   :  { %v1262_v30 = vpop.f32.mrf.mxu1  ;;  %1837 = vmax.xlane.f32.xlu0 %v1836_v59  ;;  %v1737_v13 = vpop.permute.xlu0 %1736  ;;  %v1779_v5 = vsel %vm984_vm8, %v1763_v25, %v1778_v10  ;;  %v1638_v42 = vrot.slane %v3827_v34, %v3751_v41 }
 0x67a   :  { %v1618_v26 = vpop.permute.xlu1 %1617  ;;  %v2792_v53 = vpop.f32.mrf.mxu0  ;;  %v1767_v39 = vrot.slane %v1737_v13, %v3751_v41  ;;  %v1634_v30 = vrot.slane %v3851_v1, %v3751_v41 }
 0x67b   :  { %v2786_v8 = vpop.f32.mrf.mxu1  ;;  %v1646_v24 = vrot.slane %v1618_v26, %v3751_v41 }
 0x67c   :  { %v1598_v47 = vpop.f32.mrf.mxu0  ;;  %v1780_v32 = vsel %vm986_vm9, %v1767_v39, %v1779_v5 }
 0x67d   :  { %v3934_v52 = vadd.f32 %v1598_v47, %v1556_v36  ;;  %1840 = vmax.xlane.f32.xlu0 %v1839_v11  ;;  %v1740_v22 = vpop.permute.xlu0 %1739  ;;  %v1663_v36 = vsel %vm978_vm6, %v1638_v42, %v1634_v30 }
 0x67e   :  { %v1485_v63 = vpop.f32.mrf.mxu1  ;;  %v1621_v50 = vpop.permute.xlu1 %1620  ;;  %v1771_v49 = vrot.slane %v1740_v22, %v3751_v41  ;;  %v1664_v11 = vsel %vm980_vm5, %v1642_v56, %v1663_v36 }
 0x67f   :  { %v3939_v43 = vadd.f32 %v1485_v63, %v1443_v18  ;;  %v2803_v2 = vpop.f32.mrf.mxu0  ;;  %v1845_v29 = vsel %vm329_vm3, %v3934_v52, -inf  ;;  %v1650_v60 = vrot.slane %v1621_v50, %v3751_v41  ;;  %v1665_v26 = vsel %vm982_vm7, %v1646_v24, %v1664_v11 }
 0x680   :  { %v2797_v54 = vpop.f32.mrf.mxu1  ;;  %v1781_v6 = vsel %vm988_vm10, %v1771_v49, %v1780_v32 }
 0x681   :  { %v1601_v31 = vpop.f32.mrf.mxu0  ;;  %v1842_v45 = vsel %vm329_vm3, %v3939_v43, -inf  ;;  %1846 = vmax.xlane.f32.xlu0 %v1845_v29  ;;  %v1743_v59 = vpop.permute.xlu0 %1742  ;;  %v1666_v10 = vsel %vm984_vm8, %v1650_v60, %v1665_v26 }
 0x682   :  { %v1488_v51 = vpop.f32.mrf.mxu1  ;;  %v1624_v23 = vpop.permute.xlu1 %1623  ;;  %1843 = vmax.xlane.f32.xlu1 %v1842_v45  ;;  %v1775_v4 = vrot.slane %v1743_v59, %v3751_v41 }
 0x683   :  { %v2804_v13 = vpop.f32.mrf.mxu0  ;;  %v1654_v47 = vrot.slane %v1624_v23, %v3751_v41 }
 0x684   :  { %v2798_v20 = vpop.f32.mrf.mxu1  ;;  %v1782_v53 = vsel %vm990_vm11, %v1775_v4, %v1781_v6 }
 0x685   :  { %v1824_v8 = vpop.f32.mrf.mxu0  ;;  %v1667_v63 = vsel %vm986_vm9, %v1654_v47, %v1666_v10 }
 0x686   :  { %v1711_v55 = vpop.f32.mrf.mxu1  ;;  %v3959_v57 = vadd.f32 %v1824_v8, %v1782_v53  ;;  %v1627_v1 = vpop.permute.xlu1 %1626 }
 0x687   :  { %v2815_v38 = vpop.f32.mrf.mxu0  ;;  %v1658_v25 = vrot.slane %v1627_v1, %v3751_v41 }
 0x688   :  { %v2809_v37 = vpop.f32.mrf.mxu1  ;;  %v1851_v34 = vsel %vm329_vm3, %v3959_v57, -inf }
 0x689   :  { %v1827_v22 = vpop.f32.mrf.mxu0  ;;  %1852 = vmax.xlane.f32.xlu0 %v1851_v34  ;;  %v1668_v2 = vsel %vm988_vm10, %v1658_v25, %v1667_v63 }
 0x68a   :  { %v1714_v39 = vpop.f32.mrf.mxu1  ;;  %v1630_v18 = vpop.permute.xlu1 %1629 }
 0x68b   :  { %v1662_v50 = vrot.slane %v1630_v18, %v3751_v41  ;;  %v2816_v49 = vpop.f32.mrf.mxu0 }
 0x68c   :  { %v2810_v29 = vpop.f32.mrf.mxu1 }
 0x68d   :  { %v1669_v54 = vsel %vm990_vm11, %v1662_v50, %v1668_v2 }
 0x68e   :  { %v1927_v5 = vpop.permute.xlu1 %1926  ;;  %v1712_v31 = vadd.f32 %v1711_v55, %v1669_v54 }
 0x68f   :  { %v1932_v45 = vsel %vm615_vm4, %v1927_v5, 0 }
 0x690   :  { %2818 = vmatpush3.bf16.msra.mxu1 %v1932_v45  ;;  %v1848_v59 = vsel %vm329_vm3, %v1712_v31, -inf }
 0x691   :  { %1849 = vmax.xlane.f32.xlu1 %v1848_v59  ;;  %2829 = vmatprep.subr.bf16.mxu1 %v3077_v15 }
 0x69f   :  { %1974 = vrot.lane.b32.xlu0 %v3589_v12, %s3089_s6 }
 0x6a2   :  { %2022 = vrot.lane.b32.xlu1 %v3598_v3, %s3089_s6 }
 0x6a6   :  { %2070 = vrot.lane.b32.xlu1 %v3605_v62, %s3089_s6 }
 0x6c0   :  { %v1832_v41 = vpop.xlane.xlu1 %1831 }
 0x6c1   :  { %v1854_v32 = vsub.f32 %v3792_v40, %v1832_v41 }
 0x6c3   :  { %v1862_v51 = vmul.f32 1.442695, %v1854_v32 }
 0x6c5   :  { %3007 = vpow2.f32 %v1862_v51 }
 0x6d2   :  { %v3983_v23 = vpop.eup %3007 }
 0x6d3   :  { %v1878_v4 = vsel %vm329_vm3, %v3983_v23, 0.0 }
 0x6d4   :  { %1879 = vadd.xlane.f32.xlu1 %v1878_v4 }
 0x6e5   :  { %2118 = vrot.lane.b32.xlu1 %v3607_v48, %s3089_s6 }
 0x6f9   :  { %v1835_v12 = vpop.xlane.xlu0 %1834 }
 0x6fa   :  { %v1855_v3 = vsub.f32 %v3844_v46, %v1835_v12 }
 0x6fc   :  { %v1864_v30 = vmul.f32 1.442695, %v1855_v3 }
 0x6fe   :  { %3009 = vpow2.f32 %v1864_v30 }
 0x702   :  { %v1838_v62 = vpop.xlane.xlu0 %1837 }
 0x703   :  { %v1856_v13 = vsub.f32 %v3895_v9, %v1838_v62 }
 0x705   :  { %v1866_v40 = vmul.f32 1.442695, %v1856_v13 }
 0x706   :  { %v1841_v6 = vpop.xlane.xlu0 %1840 }
 0x707   :  { %3011 = vpow2.f32 %v1866_v40  ;;  %v1857_v56 = vsub.f32 %v3909_v0, %v1841_v6 }
 0x709   :  { %v1868_v20 = vmul.f32 1.442695, %v1857_v56 }
 0x70a   :  { %v1847_v8 = vpop.xlane.xlu0 %1846 }
 0x70b   :  { %v3992_v53 = vpop.eup %3009  ;;  %3013 = vpow2.f32 %v1868_v20  ;;  %v1844_v42 = vpop.xlane.xlu1 %1843  ;;  %v1859_v22 = vsub.f32 %v3934_v52, %v1847_v8 }
 0x70c   :  { %v1858_v48 = vsub.f32 %v3939_v43, %v1844_v42  ;;  %v1881_v46 = vsel %vm329_vm3, %v3992_v53, 0.0 }
 0x70d   :  { %1882 = vadd.xlane.f32.xlu0 %v1881_v46  ;;  %v1872_v10 = vmul.f32 1.442695, %v1859_v22 }
 0x70e   :  { %v1870_v24 = vmul.f32 1.442695, %v1858_v48 }
 0x710   :  { %3015 = vpow2.f32 %v1870_v24 }
 0x712   :  { %v1853_v9 = vpop.xlane.xlu0 %1852 }
 0x713   :  { %v1861_v39 = vsub.f32 %v3959_v57, %v1853_v9 }
 0x714   :  { %v3997_v60 = vpop.eup %3011 }
 0x715   :  { %v1884_v0 = vsel %vm329_vm3, %v3997_v60, 0.0  ;;  %v1876_v18 = vmul.f32 1.442695, %v1861_v39 }
 0x716   :  { %1885 = vadd.xlane.f32.xlu1 %v1884_v0  ;;  %v1975_v55 = vpop.permute.xlu0 %1974 }
 0x717   :  { %v1980_v1 = vsel %vm615_vm4, %v1975_v55, 0 }
 0x718   :  { %v4002_v36 = vpop.eup %3013  ;;  %2824 = vmatpush3.bf16.msra.mxu0 %v1980_v1 }
 0x719   :  { %v1887_v43 = vsel %vm329_vm3, %v4002_v36, 0.0  ;;  %2835 = vmatprep.subr.bf16.mxu0 %v3077_v15 }
 0x71a   :  { %v1850_v47 = vpop.xlane.xlu1 %1849  ;;  %1888 = vadd.xlane.f32.xlu0 %v1887_v43 }
 0x71b   :  { %v1860_v38 = vsub.f32 %v1712_v31, %v1850_v47 }
 0x71d   :  { %v4007_v11 = vpop.eup %3015  ;;  %v1874_v25 = vmul.f32 1.442695, %v1860_v38 }
 0x71e   :  { %v1890_v37 = vsel %vm329_vm3, %v4007_v11, 0.0  ;;  %v2023_v52 = vpop.permute.xlu1 %2022 }
 0x71f   :  { %3017 = vpow2.f32 %v1874_v25  ;;  %1891 = vadd.xlane.f32.xlu1 %v1890_v37  ;;  %v2028_v5 = vsel %vm615_vm4, %v2023_v52, 0 }
 0x720   :  { %3019 = vpow2.f32 %v1872_v10 }
 0x721   :  { %3021 = vpow2.f32 %v1876_v18 }
 0x722   :  { %v2071_v57 = vpop.permute.xlu1 %2070 }
 0x723   :  { %v2076_v4 = vsel %vm615_vm4, %v2071_v57, 0 }
 0x72c   :  { %v4011_v34 = vpop.eup %3017 }
 0x72d   :  { %v1896_v26 = vsel %vm329_vm3, %v4011_v34, 0.0  ;;  %v4021_v63 = vpop.eup %3019 }
 0x72e   :  { %1897 = vadd.xlane.f32.xlu1 %v1896_v26  ;;  %v1893_v50 = vsel %vm329_vm3, %v4021_v63, 0.0  ;;  %v4025_v49 = vpop.eup %3021 }
 0x730   :  { %2166 = vrot.lane.b32.xlu0 %v3625_v58, %s3089_s6  ;;  %v1899_v58 = vsel %vm329_vm3, %v4025_v49, 0.0 }
 0x73f   :  { %2214 = vrot.lane.b32.xlu1 %v3616_v44, %s3089_s6 }
 0x74f   :  { %1894 = vadd.xlane.f32.xlu0 %v1893_v50 }
 0x753   :  { %1900 = vadd.xlane.f32.xlu0 %v1899_v58 }
 0x75d   :  { %v1880_v2 = vpop.xlane.xlu1 %1879 }
 0x75e   :  { %3023 = vrcp.f32 %v1880_v2 }
 0x761   :  { %v2119_v45 = vpop.permute.xlu1 %2118 }
 0x762   :  { %v2124_v13 = vsel %vm615_vm4, %v2119_v45, 0 }
 0x769   :  { %2262 = vrot.lane.b32.xlu0 %v3642_v35, %s3089_s6 }
 0x76b   :  { %v3024_v44 = vpop.eup %3023 }
 0x76c   :  { %v1910_v29 = vmul.f32 %v3024_v44, %v3983_v23 }
 0x76e   :  { %v1918_v54 = vpack.c.bf16 %v1910_v29, %v1910_v29 }
 0x770   :  { %2820 = vmatmul.mubr.msk.bf16.vlgmr.msra.gmra.mxu1 %vm329_vm3, %v1918_v54 }
 0x771   :  { %2830 = vmatpush3.bf16.msra.mxu1 %v2028_v5  ;;  %2831 = vmatprep.mubr.msk.bf16.mxu1 %vm3078_vm1, %v3077_v15 }
 0x772   :  { %2841 = vmatprep.subr.bf16.mxu1 %v3077_v15 }
 0x796   :  { %v1883_v31 = vpop.xlane.xlu0 %1882 }
 0x797   :  { %3025 = vrcp.f32 %v1883_v31 }
 0x79f   :  { %v1886_v59 = vpop.xlane.xlu1 %1885 }
 0x7a0   :  { %3027 = vrcp.f32 %v1886_v59 }
 0x7a3   :  { %v1889_v35 = vpop.xlane.xlu0 %1888 }
 0x7a4   :  { %v3026_v41 = vpop.eup %3025  ;;  %3029 = vrcp.f32 %v1889_v35 }
 0x7a5   :  { %v1911_v32 = vmul.f32 %v3026_v41, %v3992_v53 }
 0x7a7   :  { %v1919_v51 = vpack.c.bf16 %v1911_v32, %v1911_v32  ;;  %v2167_v6 = vpop.permute.xlu0 %2166 }
 0x7a8   :  { %v1892_v23 = vpop.xlane.xlu1 %1891  ;;  %v2172_v53 = vsel %vm615_vm4, %v2167_v6, 0 }
 0x7a9   :  { %3031 = vrcp.f32 %v1892_v23  ;;  %2826 = vmatmul.mubr.msk.bf16.vlgmr.msra.gmra.mxu0 %vm329_vm3, %v1919_v51 }
 0x7aa   :  { %2836 = vmatpush3.bf16.msra.mxu0 %v2076_v4  ;;  %2837 = vmatprep.mubr.msk.bf16.mxu0 %vm3078_vm1, %v3077_v15 }
 0x7ab   :  { %2847 = vmatprep.subr.bf16.mxu0 %v3077_v15 }
 0x7ad   :  { %v3028_v12 = vpop.eup %3027 }
 0x7ae   :  { %v1912_v3 = vmul.f32 %v3028_v12, %v3997_v60  ;;  %v2951_v12 = vld [vmem:[%s4186_s4 + $0x60] ss:$8 sps:$4 sm:$0xff]  }
 0x7b0   :  { %v1920_v30 = vpack.c.bf16 %v1912_v3, %v1912_v3 }
 0x7b1   :  { %v3030_v62 = vpop.eup %3029 }
 0x7b2   :  { %2832 = vmatmul.mubr.msk.bf16.vlgmr.msra.gmra.mxu1 %vm329_vm3, %v1920_v30  ;;  %v1913_v40 = vmul.f32 %v3030_v62, %v4002_v36  ;;  %v2952_v30 = vld [vmem:[%s4186_s4 + $0x50] ss:$8 sps:$4 sm:$0xff]  }
 0x7b3   :  { %2842 = vmatpush3.bf16.msra.mxu1 %v2124_v13  ;;  %2843 = vmatprep.mubr.msk.bf16.mxu1 %vm3078_vm1, %v3077_v15 }
 0x7b4   :  { %v1921_v56 = vpack.c.bf16 %v1913_v40, %v1913_v40  ;;  %2853 = vmatprep.subr.bf16.mxu1 %v3077_v15  ;;  %v4088_v40 = vld [vmem:[%s4185_s3 + $0x8] sm:$0xff] }
 0x7b5   :  { %v236_v6 = vrot.slane %v4088_v40, %v235_v7 }
 0x7b6   :  { %v3032_v20 = vpop.eup %3031  ;;  %2838 = vmatmul.mubr.msk.bf16.vlgmr.msra.gmra.mxu0 %vm329_vm3, %v1921_v56 }
 0x7b7   :  { %v1898_v42 = vpop.xlane.xlu1 %1897  ;;  %2848 = vmatpush3.bf16.msra.mxu0 %v2172_v53  ;;  %v1914_v48 = vmul.f32 %v3032_v20, %v4007_v11  ;;  %2849 = vmatprep.mubr.msk.bf16.mxu0 %vm3078_vm1, %v3077_v15 }
 0x7b8   :  { %3033 = vrcp.f32 %v1898_v42  ;;  %2859 = vmatprep.subr.bf16.mxu0 %v3077_v15 }
 0x7b9   :  { %v1922_v46 = vpack.c.bf16 %v1914_v48, %v1914_v48 }
 0x7bb   :  { %2844 = vmatmul.mubr.msk.bf16.vlgmr.msra.gmra.mxu1 %vm329_vm3, %v1922_v46  ;;  %v2215_v24 = vpop.permute.xlu1 %2214 }
 0x7bc   :  { %v2220_v8 = vsel %vm615_vm4, %v2215_v24, 0  ;;  %2855 = vmatprep.mubr.msk.bf16.mxu1 %vm3078_vm1, %v3077_v15 }
 0x7bd   :  { %2854 = vmatpush3.bf16.msra.mxu1 %v2220_v8 }
 0x7be   :  { %2865 = vmatprep.subr.bf16.mxu1 %v3077_v15 }
 0x7c5   :  { %v3034_v9 = vpop.eup %3033 }
 0x7c6   :  { %v1916_v60 = vmul.f32 %v3034_v9, %v4011_v34 }
 0x7c8   :  { %v1924_v0 = vpack.c.bf16 %v1916_v60, %v1916_v60 }
 0x7ca   :  { %2856 = vmatmul.mubr.msk.bf16.vlgmr.msra.gmra.mxu1 %vm329_vm3, %v1924_v0 }
 0x7cb   :  { %2869 = vmatprep.mubr.msk.bf16.mxu1 %vm3078_vm1, %v3077_v15  ;;  %2866 = vmatpush3.bf16.msra.mxu1 %v2951_v12 }
 0x7cc   :  { %2867 = vmatprep.subr.bf16.mxu1 %v3077_v15 }
 0x7cf   :  { %2868 = vmatpush3.bf16.msra.mxu1 %v2952_v30 }
 0x7d0   :  { %2881 = vmatprep.subr.bf16.mxu1 %v3077_v15 }
 0x7d8   :  { %v1895_v55 = vpop.xlane.xlu0 %1894 }
 0x7d9   :  { %3035 = vrcp.f32 %v1895_v55 }
 0x7dc   :  { %v1901_v1 = vpop.xlane.xlu0 %1900 }
 0x7dd   :  { %3037 = vrcp.f32 %v1901_v1 }
 0x7e0   :  { %v2263_v47 = vpop.permute.xlu0 %2262 }
 0x7e1   :  { %v2268_v25 = vsel %vm615_vm4, %v2263_v47, 0 }
 0x7e6   :  { %v3036_v36 = vpop.eup %3035 }
 0x7e7   :  { %v1915_v43 = vmul.f32 %v3036_v36, %v4021_v63 }
 0x7e9   :  { %v1923_v38 = vpack.c.bf16 %v1915_v43, %v1915_v43 }
 0x7ea   :  { %v3038_v11 = vpop.eup %3037 }
 0x7eb   :  { %2850 = vmatmul.mubr.msk.bf16.vlgmr.msra.gmra.mxu0 %vm329_vm3, %v1923_v38  ;;  %v1917_v37 = vmul.f32 %v3038_v11, %v4025_v49 }
 0x7ec   :  { %2860 = vmatpush3.bf16.msra.mxu0 %v2268_v25  ;;  %2861 = vmatprep.mubr.msk.bf16.mxu0 %vm3078_vm1, %v3077_v15 }
 0x7ed   :  { %2873 = vmatprep.subr.bf16.mxu0 %v3077_v15  ;;  %v1925_v34 = vpack.c.bf16 %v1917_v37, %v1917_v37 }
 0x7f3   :  { %2862 = vmatmul.mubr.msk.bf16.vlgmr.msra.gmra.mxu0 %vm329_vm3, %v1925_v34 }
 0x7f4   :  { %2877 = vmatprep.mubr.msk.bf16.mxu0 %vm3078_vm1, %v3077_v15 }
 0x830   :  { %v4075_v26 = vpop.f32.mrf.mxu1 }
 0x832   :  { %v2821_v22 = vpop.f32.mrf.mxu1 }
 0x834   :  { %v1971_v10 = vpop.f32.mrf.mxu1 }
 0x836   :  { %v2822_v39 = vpop.f32.mrf.mxu1 }
 0x869   :  { %v2016_v18 = vpop.f32.mrf.mxu0 }
 0x86b   :  { %v2827_v63 = vpop.f32.mrf.mxu0 }
 0x86d   :  { %v2019_v50 = vpop.f32.mrf.mxu0 }
 0x86e   :  { %v261_v50 = vsub.s32 7, %v3151_v27 }
 0x86f   :  { %v2828_v58 = vpop.f32.mrf.mxu0 }
 0x872   :  { %v2064_v52 = vpop.f32.mrf.mxu1 }
 0x874   :  { %v2833_v57 = vpop.f32.mrf.mxu1 }
 0x876   :  { %v2067_v49 = vpop.f32.mrf.mxu1  ;;  %v2112_v2 = vpop.f32.mrf.mxu0 }
 0x877   :  { %v2930_v44 = vpack.i.bf16 %v2112_v2, %v2064_v52 }
 0x878   :  { %v2834_v29 = vpop.f32.mrf.mxu1  ;;  %v2839_v54 = vpop.f32.mrf.mxu0 }
 0x879   :  { %2931 = vrot.lane.b32.xlu1 %v2930_v44, %s3090_s7  ;;  %v3053_v29 = vld [vmem:[%s4182_s0] sm:$0xff] }
 0x87a   :  { %v2115_v5 = vpop.f32.mrf.mxu0 }
 0x87b   :  { %v2160_v31 = vpop.f32.mrf.mxu1 }
 0x87c   :  { %v2840_v45 = vpop.f32.mrf.mxu0 }
 0x87d   :  { %v2845_v59 = vpop.f32.mrf.mxu1 }
 0x87f   :  { %v2163_v35 = vpop.f32.mrf.mxu1 }
 0x881   :  { %v2846_v41 = vpop.f32.mrf.mxu1 }
 0x882   :  { %v3054_v41 = vld [vmem:[%s4182_s0 + $0x8] sm:$0xff] }
 0x88a   :  { %v2256_v32 = vpop.f32.mrf.mxu1 }
 0x88c   :  { %v2857_v51 = vpop.f32.mrf.mxu1 }
 0x88e   :  { %v2259_v23 = vpop.f32.mrf.mxu1 }
 0x88f   :  { %v246_v23 = vrot.slane %v4088_v40, %v245_v61  ;;  %v262_v61 = vrot.slane %v4088_v40, %v261_v50 }
 0x890   :  { %v2858_v4 = vpop.f32.mrf.mxu1 }
 0x8ab   :  { %v2208_v3 = vpop.f32.mrf.mxu0 }
 0x8ac   :  { %v2935_v62 = vpack.i.bf16 %v2208_v3, %v2160_v31 }
 0x8ad   :  { %v2851_v13 = vpop.f32.mrf.mxu0 }
 0x8ae   :  { %2936 = vrot.lane.b32.xlu0 %v2935_v62, %s3091_s13 }
 0x8af   :  { %v2211_v56 = vpop.f32.mrf.mxu0 }
 0x8b1   :  { %v2852_v20 = vpop.f32.mrf.mxu0 }
 0x8b2   :  { %238 = vrot.lane.b32.xlu0 %v236_v6, %s3092_s17 }
 0x8b3   :  { %v2304_v53 = vpop.f32.mrf.mxu0 }
 0x8b4   :  { %v2940_v42 = vpack.i.bf16 %v2304_v53, %v2256_v32 }
 0x8b5   :  { %v2863_v48 = vpop.f32.mrf.mxu0 }
 0x8b6   :  { %2941 = vrot.lane.b32.xlu1 %v2940_v42, %s3093_s18 }
 0x8b7   :  { %v2307_v46 = vpop.f32.mrf.mxu0 }
 0x8b9   :  { %v2864_v24 = vpop.f32.mrf.mxu0 }
 0x8ba   :  { %v2953_v24 = vld [vmem:[%s4186_s4 + $0x80] ss:$8 sps:$4 sm:$0xff]  }
 0x8bb   :  { %2874 = vmatpush3.bf16.msra.mxu0 %v2953_v24 }
 0x8bc   :  { %2875 = vmatprep.subr.bf16.mxu0 %v3077_v15 }
 0x8eb   :  { %v2932_v9 = vpop.permute.xlu1 %2931 }
 0x8ec   :  { %v2934_v0 = vunpack.i.h.bf16 %v2932_v9  ;;  %v2933_v55 = vunpack.i.l.bf16 %v2932_v9 }
 0x8ee   :  { %v2335_v38 = vsel %vm329_vm3, %v2016_v18, %v2934_v0  ;;  %v2334_v11 = vsel %vm329_vm3, %v4075_v26, %v2933_v55  ;;  %v3052_v26 = vld [vmem:[%s4185_s3] sm:$0xff] }
 0x8ef   :  { %v2345_v18 = vrot.slane %v3052_v26, %v261_v50 }
 0x920   :  { %v2937_v8 = vpop.permute.xlu0 %2936 }
 0x921   :  { %v2939_v36 = vunpack.i.h.bf16 %v2937_v8  ;;  %v2938_v43 = vunpack.i.l.bf16 %v2937_v8 }
 0x923   :  { %v2337_v34 = vsel %vm51_vm0, %v2335_v38, %v2939_v36  ;;  %v2336_v22 = vsel %vm51_vm0, %v2334_v11, %v2938_v43 }
 0x924   :  { %v239_v60 = vpop.permute.xlu0 %238 }
 0x925   :  { %v241_v7 = vadd.f32 %v239_v60, %v3208_v17  ;;  %v242_v1 = vadd.f32 %v239_v60, %v3214_v21 }
 0x927   :  { %2406 = vrot.lane.b32.xlu0 %v242_v1, %s3092_s17  ;;  %2404 = vrot.lane.b32.xlu1 %v241_v7, %s3092_s17 }
 0x928   :  { %v2942_v47 = vpop.permute.xlu1 %2941 }
 0x929   :  { %v2944_v25 = vunpack.i.h.bf16 %v2942_v47  ;;  %v2943_v37 = vunpack.i.l.bf16 %v2942_v47  ;;  %v256_v47 = vrot.slane %v4088_v40, %v255_v16  ;;  %v2957_v16 = vld [vmem:[%s4186_s4 + $0xa0] ss:$8 sps:$4 sm:$0xff]  }
 0x92b   :  { %v2339_v10 = vsel %vm2338_vm12, %v2336_v22, %v2943_v37  ;;  %v2340_v39 = vsel %vm2338_vm12, %v2337_v34, %v2944_v25  ;;  %v257_v38 = vadd.f32 %v256_v47, %v3212_v19  ;;  %v258_v25 = vadd.f32 %v256_v47, %v3443_v14 }
 0x92c   :  { %v2341_v63 = vpack.c.bf16 %v2340_v39, %v2339_v10 }
 0x92d   :  { %v2440_v34 = vadd.f32 1.0, %v257_v38  ;;  %v2441_v10 = vadd.f32 1.0, %v258_v25 }
 0x92e   :  { %2870 = vmatmul.mubr.msk.bf16.vlgmr.msra.gmra.mxu1 %vm271_vm2, %v2341_v63 }
 0x92f   :  { %2889 = vmatprep.mubr.msk.bf16.mxu1 %vm3078_vm1, %v3077_v15 }
 0x999   :  { %v2405_v57 = vpop.permute.xlu1 %2404  ;;  %v2407_v31 = vpop.permute.xlu0 %2406 }
 0x9ee   :  { %v2395_v58 = vpop.f32.mrf.mxu1 }
 0x9ef   :  { %v2396_v52 = vadd.f32 %v2395_v58, %v2345_v18 }
 0x9f0   :  { %v2871_v49 = vpop.f32.mrf.mxu1 }
 0x9f1   :  { %v2410_v2 = vmul.f32 %v2405_v57, %v2396_v52  ;;  %v2958_v57 = vld [vmem:[%s4186_s4 + $0x90] ss:$8 sps:$4 sm:$0xff]   ;;  %v2458_v49 = vrot.slane %v4088_v40, %v81_v28 }
 0x9f2   :  { %v2398_v44 = vpop.f32.mrf.mxu1 }
 0x9f3   :  { %v4111_v54 = vadd.f32 %v3053_v29, %v2410_v2  ;;  %v2399_v5 = vadd.f32 %v2398_v44, %v2345_v18 }
 0x9f4   :  { %v2872_v45 = vpop.f32.mrf.mxu1 }
 0x9f5   :  { %v2411_v59 = vmul.f32 %v2407_v31, %v2399_v5  ;;  %v2414_v35 = vsel %vm271_vm2, %v4111_v54, 0.0 }
 0x9f6   :  { %2415 = vadd.xlane.f32.xlu1 %v2414_v35 }
 0x9f7   :  { %v4118_v32 = vadd.f32 %v3054_v41, %v2411_v59 }
 0x9f9   :  { %v2417_v51 = vsel %vm271_vm2, %v4118_v32, 0.0 }
 0x9fa   :  { %2418 = vadd.xlane.f32.xlu0 %v2417_v51 }
 0xa10   :  { %248 = vrot.lane.b32.xlu0 %v246_v23, %s3081_s15 }
 0xa7f   :  { %v2416_v4 = vpop.xlane.xlu1 %2415 }
 0xa80   :  { %v2420_v12 = vmul.f32 0.03125, %v2416_v4 }
 0xa82   :  { %v2422_v3 = vsub.f32 %v4111_v54, %v2420_v12 }
 0xa83   :  { %v2419_v30 = vpop.xlane.xlu0 %2418 }
 0xa84   :  { %v2421_v62 = vmul.f32 0.03125, %v2419_v30  ;;  %v2424_v13 = vmul.f32 %v2422_v3, %v2422_v3 }
 0xa86   :  { %v2423_v6 = vsub.f32 %v4118_v32, %v2421_v62  ;;  %v2426_v56 = vsel %vm271_vm2, %v2424_v13, 0.0  ;;  %v2533_v62 = vrot.slane %v4088_v40, %v87_v33 }
 0xa87   :  { %2427 = vadd.xlane.f32.xlu1 %v2426_v56  ;;  %v249_v20 = vpop.permute.xlu0 %248 }
 0xa88   :  { %v252_v53 = vadd.f32 %v249_v20, %v3214_v21  ;;  %v2425_v42 = vmul.f32 %v2423_v6, %v2423_v6  ;;  %v251_v46 = vadd.f32 %v249_v20, %v3208_v17  ;;  %v2954_v21 = vld [vmem:[%s4186_s4 + $0x70] ss:$8 sps:$4 sm:$0xff]  }
 0xa89   :  { %2876 = vmatpush3.bf16.msra.mxu0 %v2954_v21 }
 0xa8a   :  { %2448 = vrot.lane.b32.xlu0 %v252_v53, %s3080_s10  ;;  %v2429_v48 = vsel %vm271_vm2, %v2425_v42, 0.0 }
 0xa8b   :  { %2430 = vadd.xlane.f32.xlu1 %v2429_v48 }
 0xa8e   :  { %264 = vrot.lane.b32.xlu0 %v262_v61, %s3080_s10 }
 0xa9c   :  { %2446 = vrot.lane.b32.xlu1 %v251_v46, %s3080_s10 }
 0xafc   :  { %v2449_v8 = vpop.permute.xlu0 %2448 }
 0xb00   :  { %v265_v9 = vpop.permute.xlu0 %264 }
 0xb01   :  { %v267_v60 = vadd.f32 %v265_v9, %v3212_v19  ;;  %v268_v17 = vadd.f32 %v265_v9, %v3443_v14  ;;  %v2955_v19 = vld [vmem:[%s4186_s4 + $0xc0] ss:$8 sps:$4 sm:$0xff]   ;;  %v2956_v14 = vld [vmem:[%s4186_s4 + $0xb0] ss:$8 sps:$4 sm:$0xff]   ;;  %s3094_s4 = smov [#allocation2]  }
 0xb02   :  { %2882 = vmatpush3.bf16.msra.mxu1 %v2955_v19  ;;  %s2622_s6 = sshll.u32 %s3094_s4, 4  ;;  %s2623_s6 = int_to_ptr.vmem [resolvable:$true] %s2622_s6 }
 0xb03   :  { %2607 = vrot.lane.b32.xlu0 %v268_v17, %s3081_s15  ;;  %2605 = vrot.lane.b32.xlu1 %v267_v60, %s3081_s15  ;;  %s3055_s8 = scalar_lea.vmem %s2623_s6, 256  ;;  %p3060_p1 = scmp.lt.s32.totalorder %s2623_s6, %s2623_s6 }
 0xb04   :  { %2883 = vmatprep.subr.bf16.mxu1 %v3077_v15  ;;  %p3056_p0 = scmp.ne.s32.totalorder %s2623_s6, %s3055_s8  ;;  %p3061_p2 = scmp.lt.s32.totalorder %s3055_s8, %s3055_s8 }
 0xb06   :  { %2884 = vmatpush3.bf16.msra.mxu1 %v2956_v14  ;;  %p3062_p3 = por %p3061_p2, %p3060_p1 }
 0xb07   :  { %2885 = vmatprep.subr.bf16.mxu1 %v3077_v15 }
 0xb08   :  { %p3063_p4 = pnand %p3062_p3, %p3056_p0 }
 0xb0a   :  { %2886 = vmatpush3.bf16.msra.mxu1 %v2957_v16 }
 0xb0b   :  { %2887 = vmatprep.subr.bf16.mxu1 %v3077_v15 }
 0xb0e   :  { %2888 = vmatpush3.bf16.msra.mxu1 %v2958_v57 }
 0xb10   :  { %v2428_v0 = vpop.xlane.xlu1 %2427 }
 0xb11   :  { %v2432_v55 = vmul.f32 0.03125, %v2428_v0 }
 0xb13   :  { %v2434_v7 = vadd.f32 1e-05, %v2432_v55 }
 0xb14   :  { %v2431_v1 = vpop.xlane.xlu1 %2430 }
 0xb15   :  { %3039 = vrsqrt.f32 %v2434_v7  ;;  %v2433_v36 = vmul.f32 0.03125, %v2431_v1 }
 0xb17   :  { %v2435_v43 = vadd.f32 1e-05, %v2433_v36 }
 0xb18   :  { %v2447_v26 = vpop.permute.xlu1 %2446 }
 0xb19   :  { %3041 = vrsqrt.f32 %v2435_v43 }
 0xb22   :  { %v3040_v11 = vpop.eup %3039 }
 0xb23   :  { %v2438_v37 = vmul.f32 %v3040_v11, %v2422_v3 }
 0xb25   :  { %v2442_v63 = vmul.f32 %v2440_v34, %v2438_v37 }
 0xb26   :  { %v3042_v22 = vpop.eup %3041 }
 0xb27   :  { %v2439_v39 = vmul.f32 %v3042_v22, %v2423_v6  ;;  %v2452_v58 = vadd.f32 %v2447_v26, %v2442_v63 }
 0xb29   :  { %v2443_v50 = vmul.f32 %v2441_v10, %v2439_v39 }
 0xb2b   :  { %v2453_v18 = vadd.f32 %v2449_v8, %v2443_v50 }
 0xb2d   :  { %v2454_v52 = vpack.c.bf16 %v2453_v18, %v2452_v58 }
 0xb2f   :  { %2878 = vmatmul.mubr.msk.bf16.vlgmr.msra.gmra.mxu0 %vm271_vm2, %v2454_v52 }
 0xb75   :  { %v2606_v56 = vpop.permute.xlu1 %2605  ;;  %v2608_v46 = vpop.permute.xlu0 %2607 }
 0xbef   :  { %v2508_v2 = vpop.f32.mrf.mxu0 }
 0xbf0   :  { %v2509_v44 = vadd.f32 %v2508_v2, %v2458_v49 }
 0xbf1   :  { %v2879_v29 = vpop.f32.mrf.mxu0 }
 0xbf2   :  { %v2673_v5 = vmul.f32 -1.442695, %v2509_v44 }
 0xbf3   :  { %v2511_v31 = vpop.f32.mrf.mxu0 }
 0xbf4   :  { %3043 = vpow2.f32 %v2673_v5  ;;  %v2512_v45 = vadd.f32 %v2511_v31, %v2458_v49 }
 0xbf5   :  { %v2880_v59 = vpop.f32.mrf.mxu0 }
 0xbf6   :  { %v2674_v35 = vmul.f32 -1.442695, %v2512_v45 }
 0xbf8   :  { %3045 = vpow2.f32 %v2674_v35 }
 0xc01   :  { %v3044_v15 = vpop.eup %3043 }
 0xc02   :  { %v2521_v41 = vadd.f32 1.0, %v3044_v15 }
 0xc04   :  { %3047 = vrcp.f32 %v2521_v41 }
 0xc05   :  { %v3046_v51 = vpop.eup %3045 }
 0xc06   :  { %v2522_v23 = vadd.f32 1.0, %v3046_v51 }
 0xc08   :  { %3049 = vrcp.f32 %v2522_v23 }
 0xc11   :  { %v3048_v4 = vpop.eup %3047 }
 0xc12   :  { %v2527_v3 = vmul.f32 %v3048_v4, %v2509_v44 }
 0xc15   :  { %v3050_v12 = vpop.eup %3049 }
 0xc16   :  { %v2528_v28 = vmul.f32 %v3050_v12, %v2512_v45 }
 0xc18   :  { %v2529_v30 = vpack.c.bf16 %v2528_v28, %v2527_v3 }
 0xc1a   :  { %2890 = vmatmul.mubr.msk.bf16.vlgmr.msra.gmra.mxu1 %vm2558_vm13, %v2529_v30 }
 0xcda   :  { %v2596_v13 = vpop.f32.mrf.mxu1 }
 0xcdb   :  { %v2597_v6 = vadd.f32 %v2596_v13, %v2533_v62 }
 0xcdc   :  { %v2891_v20 = vpop.f32.mrf.mxu1 }
 0xcdd   :  { %v2611_v53 = vmul.f32 %v2606_v56, %v2597_v6 }
 0xcde   :  { %v2599_v42 = vpop.f32.mrf.mxu1 }
 0xcdf   :  { %v2613_v61 = vadd.f32 %v2611_v53, %v4111_v54  ;;  %v2600_v48 = vadd.f32 %v2599_v42, %v2533_v62 }
 0xce0   :  { %v2892_v24 = vpop.f32.mrf.mxu1 }
 0xce1   :  { %2615 = vst.msk [vmem:[#allocation2] sm:$0xff] %vm271_vm2, %v2613_v61  ;;  %v2612_v21 = vmul.f32 %v2608_v46, %v2600_v48 }
 0xce3   :  { %v2614_v27 = vadd.f32 %v2612_v21, %v4118_v32 }
 0xce5   :  { %2616 = vst.msk [vmem:[#allocation2 + $0x8] sm:$0xff] %vm271_vm2, %v2614_v27 }
 0xce6   :  { %3066 = shalt.err (!%p3063_p4)
}
 0xce7   :  { %s3095_s9 = smov 128  }
 0xce8   :  { %2628 = dma.vmem_to_hbm [thread:$0]  %s2623_s6, 256, %s4187_s5, [#allocation3], %s3095_s9, %s3095_s9, %s3090_s7  }
 0xce9   :  { %3075 = dma.done.wait [#allocation3], 256  }
 0xcea   :  { %3076 = vsyncadd [#allocation3], 4294967040 }
 0xceb   :  { %2632 = vsyncpa [#allocation3], 1 }

</bundles_post_ra>
